<compile_context>
chip_gen: v7x
topology: tpu7x:2x2x1
jax: 0.10.0
libtpu: 0.0.40
codegen_flags: <defaults>
</compile_context>

<pallas_src>
import math

import jax
import jax.numpy as jnp
from jax.experimental import pallas as pl
from jax.experimental.pallas import tpu as pltpu

GROUP_SIZE = 4  # p4 rotation group, as in create_structured_patches


def _round_up(x, m):
    return ((x + m - 1) // m) * m


# ----------------------------------------------------------------------------
# Glue: unfold-compatible patch extraction, built directly in (C*K, M) order
# ----------------------------------------------------------------------------
def im2col_ck_m(x, kh, kw, sh, sw):
    """x: (B, C, H, W) -> (C*K, B*L), K = kh*kw row-major, L row-major spatial."""
    B, C, H, W = x.shape
    h_iter = (H - kh) // sh + 1
    w_iter = (W - kw) // sw + 1
    slices = []
    for di in range(kh):
        for dj in range(kw):
            slices.append(x[:, :, di:di + sh * h_iter:sh, dj:dj + sw * w_iter:sw])
    p = jnp.stack(slices, axis=0)              # (K, B, C, h, w)
    p = p.transpose(2, 0, 1, 3, 4)             # (C, K, B, h, w)
    return p.reshape(C * kh * kw, B * h_iter * w_iter), h_iter, w_iter


def rotated_filter_bank_T(filter_weights, kh, gf_pad):
    """filter_weights: (F, kh*kh) -> (gf_pad, kh*kh).

    Row g*F + f holds filter f rotated by group element g (row-major flatten),
    so that dot(rot90(patch,(4-g)%4), w_f) == dot(patch, row[g*F+f])."""
    F = filter_weights.shape[0]
    per_g = []
    for g in range(GROUP_SIZE):
        wg = jnp.rot90(filter_weights.reshape(F, kh, kh), k=g, axes=(-2, -1))
        per_g.append(wg.reshape(F, kh * kh))
    w_rot = jnp.concatenate(per_g, axis=0)     # (G*F, K)
    gf = GROUP_SIZE * F
    if gf_pad > gf:
        w_rot = jnp.pad(w_rot, ((0, gf_pad - gf), (0, 0)))
    return w_rot                               # (gf_pad, K)


# ----------------------------------------------------------------------------
# Pallas kernel: one block-diagonal matmul + cos + channel-sum + bias, per M tile
# ----------------------------------------------------------------------------
def _make_quanv_kernel(C, gf_pad):
    def kernel(p_ref, w_ref, b_ref, o_ref):
        # p_ref: (CK_pad, Mt)  w_ref: (C*gf_pad, CK_pad)  b_ref: (gf_pad, 1)
        # o_ref: (gf_pad, Mt)
        z = jnp.dot(w_ref[...], p_ref[...],
                    preferred_element_type=jnp.float32)      # MXU: (C*gf_pad, Mt)
        zc = jnp.cos(z)                                       # EUP, f32
        acc = zc[0:gf_pad, :]
        for c in range(1, C):                                 # static unrolled VPU adds
            acc = acc + zc[c * gf_pad:(c + 1) * gf_pad, :]
        o_ref[...] = (acc + b_ref[...]).astype(o_ref.dtype)   # bias lane-broadcast
    return kernel


def _quanv_pallas(p_ckm, w_blk, bias_col, C, gf_pad, m_tile):
    """p_ckm: (CK_pad, M_pad); w_blk: (C*gf_pad, CK_pad); bias_col: (gf_pad, 1)."""
    CK_pad, M_pad = p_ckm.shape
    CGF = w_blk.shape[0]
    grid = (M_pad // m_tile,)
    return pl.pallas_call(
        _make_quanv_kernel(C, gf_pad),
        out_shape=jax.ShapeDtypeStruct((gf_pad, M_pad), jnp.float32),
        grid_spec=pltpu.PrefetchScalarGridSpec(
            num_scalar_prefetch=0,
            grid=grid,  # M tiles, fully independent
            in_specs=[
                pl.BlockSpec((CK_pad, m_tile), lambda i: (0, i)),
                pl.BlockSpec((CGF, CK_pad), lambda i: (0, 0)),
                pl.BlockSpec((gf_pad, 1), lambda i: (0, 0)),
            ],
            out_specs=pl.BlockSpec((gf_pad, m_tile), lambda i: (0, i)),
        ),
        compiler_params=pltpu.CompilerParams(
            dimension_semantics=("parallel",),
            vmem_limit_bytes=32 * 1024 * 1024,  # tiny working set; safe on v5e/v6e/v7x
        ),
    )(p_ckm, w_blk, bias_col)


# ----------------------------------------------------------------------------
# Forward pass (module semantics)
# ----------------------------------------------------------------------------
def equivariant_quanvolution_forward(x, filter_weights, bias,
                                     kernel_size=3, stride=1,
                                     m_tile=512, compute_dtype=jnp.float32):
    """x: (B, C, H, W) -> (|G|=4, B, F, h_iter, w_iter), float32.

    compute_dtype=jnp.bfloat16 halves patch DMA traffic on v6e/v7x (accumulation
    stays f32); default f32 to match the reference within 1e-4.
    """
    B, C, H, W = x.shape
    F = filter_weights.shape[0]
    GF = GROUP_SIZE * F
    gf_pad = _round_up(GF, 8)                  # sublane-aligned filter-bank rows

    p_ckm, h_iter, w_iter = im2col_ck_m(x, kernel_size, kernel_size,
                                        stride, stride)       # (C*K, M)
    CK = p_ckm.shape[0]
    L = h_iter * w_iter
    M = B * L

    # M sits on the lane axis: pick a 128-aligned tile.  Use the requested tile
    # (default 512) for large M; for small M shrink to >=256 lanes so at least
    # two tiles exist and both v7x TensorCores get work (256 = full MXU width
    # on v6e/v7x, 2x128 on v5e).
    m_tile = max(128, (m_tile // 128) * 128)
    if M <= 256:
        m_tile = max(128, _round_up(M, 128))
    else:
        half = _round_up(-(-M // 2), 128)
        m_tile = max(256, min(m_tile, half))
    M_pad = _round_up(M, m_tile)
    if M_pad > M:
        p_ckm = jnp.pad(p_ckm, ((0, 0), (0, M_pad - M)))

    # Sublane-align the contraction axis (extra zero rows/cols cancel in the dot).
    CK_pad = _round_up(CK, 8)
    if CK_pad > CK:
        p_ckm = jnp.pad(p_ckm, ((0, CK_pad - CK), (0, 0)))

    w_rot_t = rotated_filter_bank_T(filter_weights, kernel_size, gf_pad)  # (gf_pad, K)
    # Block-diagonal bank folds the channel reduction into one contraction.
    w_blk = jnp.kron(jnp.eye(C, dtype=w_rot_t.dtype), w_rot_t)  # (C*gf_pad, C*K)
    if CK_pad > CK:
        w_blk = jnp.pad(w_blk, ((0, 0), (0, CK_pad - CK)))       # (C*gf_pad, CK_pad)
    bias_col = jnp.pad(jnp.tile(bias, GROUP_SIZE),
                       (0, gf_pad - GF)).reshape(gf_pad, 1)      # row g*F+f -> bias[f]

    out = _quanv_pallas(p_ckm.astype(compute_dtype),
                        w_blk.astype(compute_dtype),
                        bias_col.astype(jnp.float32),
                        C, gf_pad, m_tile)                      # (gf_pad, M_pad)

    out = out[:GF, :M]                                          # drop padding
    out = out.reshape(GROUP_SIZE, F, B, h_iter, w_iter)
    return out.transpose(0, 2, 1, 3, 4)                         # (G, B, F, h, w)


# ----------------------------------------------------------------------------
# Pure-JAX reference that literally rotates the patches (create_structured_patches)
# ----------------------------------------------------------------------------
def reference_forward(x, filter_weights, bias, kernel_size=3, stride=1):
    B, C, H, W = x.shape
    F = filter_weights.shape[0]
    K = kernel_size * kernel_size
    p_ckm, h_iter, w_iter = im2col_ck_m(x, kernel_size, kernel_size,
                                        stride, stride)
    L = h_iter * w_iter
    M = B * L
    p = p_ckm.reshape(C, K, M)
    out = jnp.zeros((GROUP_SIZE, M, F), jnp.float32)
    for f in range(F):
        w_f = filter_weights[f]
        for c in range(C):
            p2 = p[c].T.reshape(M, kernel_size, kernel_size)
            for g in range(GROUP_SIZE):
                k_rot = (4 - g) % 4            # same rotation schedule as the module
                rp = jnp.rot90(p2, k=k_rot, axes=(-2, -1)).reshape(M, -1)
                out = out.at[g, :, f].add(jnp.cos(rp @ w_f))   # surrogate filter
    out = out + bias.reshape(1, 1, F)
    out = out.reshape(GROUP_SIZE, B, L, F).transpose(0, 1, 3, 2)
    return out.reshape(GROUP_SIZE, B, F, h_iter, w_iter)


if __name__ == "__main__":
    key = jax.random.PRNGKey(0)
    k_x, k_w = jax.random.split(key)

    B, C, H, W = 2, 4, 16, 16          # input_image_shape = (16, 16)
    F_FILTERS = 2                      # len(self.torch_layers)
    KSIZE, STRIDE = 3, 1

    x = jax.random.normal(k_x, (B, C, H, W), dtype=jnp.float32)
    # surrogate "quantum circuit weights": uniform_(b=2*pi), one 9-vector / filter
    filter_weights = jax.random.uniform(
        k_w, (F_FILTERS, KSIZE * KSIZE), dtype=jnp.float32,
        minval=0.0, maxval=2.0 * math.pi)
    bias = 0.1 * jnp.ones((F_FILTERS,), dtype=jnp.float32)  # nn.Parameter(ones*0.1)

    out = equivariant_quanvolution_forward(x, filter_weights, bias,
                                           kernel_size=KSIZE, stride=STRIDE)
    out = jax.block_until_ready(out)

    ref = reference_forward(x, filter_weights, bias,
                            kernel_size=KSIZE, stride=STRIDE)
    assert out.shape == (GROUP_SIZE, B, F_FILTERS, 14, 14), out.shape
    assert out.dtype == jnp.float32
    assert jnp.allclose(out, ref, rtol=1e-5, atol=1e-4), \
        float(jnp.max(jnp.abs(out - ref)))

    print("KERNEL_OK")
</pallas_src>

<mosaic_0001>
module attributes {stable_mosaic.version = 11 : i64} {
  func.func @kernel(%arg0: i32, %arg1: memref<40x256xf32, #tpu.memory_space<vmem>>, %arg2: memref<32x40xf32, #tpu.memory_space<vmem>>, %arg3: memref<8x1xf32, #tpu.memory_space<vmem>>, %arg4: memref<8x256xf32, #tpu.memory_space<vmem>>) attributes {dimension_semantics = [#tpu.dimension_semantics<parallel>], iteration_bounds = array<i64: 2>, scalar_prefetch = 0 : i64, scratch_operands = 0 : i64, tpu.core_type = #tpu.core_type<tc>, window_params = [{transform_indices = @transform_0, window_bounds = array<i64: 40, 256>}, {pipeline_mode = #tpu.pipeline_mode<synchronous>, transform_indices = @transform_1, window_bounds = array<i64: 32, 40>}, {pipeline_mode = #tpu.pipeline_mode<synchronous>, transform_indices = @transform_2, window_bounds = array<i64: 8, 1>}, {transform_indices = @transform_3, window_bounds = array<i64: 8, 256>}]} {
    %c0 = arith.constant 0 : index
    %c0_0 = arith.constant 0 : index
    %0 = vector.load %arg2[%c0, %c0_0] : memref<32x40xf32, #tpu.memory_space<vmem>>, vector<32x40xf32>
    %c0_1 = arith.constant 0 : index
    %c0_2 = arith.constant 0 : index
    %1 = vector.load %arg1[%c0_1, %c0_2] : memref<40x256xf32, #tpu.memory_space<vmem>>, vector<40x256xf32>
    %cst = arith.constant dense<0.000000e+00> : vector<32x256xf32>
    %2 = tpu.matmul %0, %1, %cst {dimension_numbers = #tpu.dot_dimension_numbers<[1], [0], [0], [1], [0, 0, 1, 1], [], []>} : vector<32x40xf32>, vector<40x256xf32>, vector<32x256xf32> -> vector<32x256xf32>
    %3 = math.cos %2 : vector<32x256xf32>
    %4 = vector.extract_strided_slice %3 {offsets = [0, 0], sizes = [8, 256], strides = [1, 1]} : vector<32x256xf32> to vector<8x256xf32>
    %5 = vector.extract_strided_slice %3 {offsets = [8, 0], sizes = [8, 256], strides = [1, 1]} : vector<32x256xf32> to vector<8x256xf32>
    %6 = arith.addf %4, %5 : vector<8x256xf32>
    %7 = vector.extract_strided_slice %3 {offsets = [16, 0], sizes = [8, 256], strides = [1, 1]} : vector<32x256xf32> to vector<8x256xf32>
    %8 = arith.addf %6, %7 : vector<8x256xf32>
    %9 = vector.extract_strided_slice %3 {offsets = [24, 0], sizes = [8, 256], strides = [1, 1]} : vector<32x256xf32> to vector<8x256xf32>
    %10 = arith.addf %8, %9 : vector<8x256xf32>
    %c0_3 = arith.constant 0 : index
    %c0_4 = arith.constant 0 : index
    %11 = vector.load %arg3[%c0_3, %c0_4] : memref<8x1xf32, #tpu.memory_space<vmem>>, vector<8x1xf32>
    %12 = vector.broadcast %11 : vector<8x1xf32> to vector<8x256xf32>
    %13 = arith.addf %10, %12 : vector<8x256xf32>
    %c0_5 = arith.constant 0 : index
    %c0_6 = arith.constant 0 : index
    %14 = vector.load %arg4[%c0_5, %c0_6] : memref<8x256xf32, #tpu.memory_space<vmem>>, vector<8x256xf32>
    tpu.vector_store %arg4[%c0_5, %c0_6], %13 {strides = array<i32>} : memref<8x256xf32, #tpu.memory_space<vmem>>, vector<8x256xf32>,
    return
  }
  func.func @transform_0(%arg0: i32) -> (i32, i32) {
    %c0_i32 = arith.constant 0 : i32
    %c0_i32_0 = arith.constant 0 : i32
    return %c0_i32, %arg0 : i32, i32
  }
  func.func @transform_1(%arg0: i32) -> (i32, i32) {
    %c0_i32 = arith.constant 0 : i32
    %c0_i32_0 = arith.constant 0 : i32
    %c0_i32_1 = arith.constant 0 : i32
    return %c0_i32, %c0_i32_0 : i32, i32
  }
  func.func @transform_2(%arg0: i32) -> (i32, i32) {
    %c0_i32 = arith.constant 0 : i32
    %c0_i32_0 = arith.constant 0 : i32
    %c0_i32_1 = arith.constant 0 : i32
    return %c0_i32, %c0_i32_0 : i32, i32
  }
  func.func @transform_3(%arg0: i32) -> (i32, i32) {
    %c0_i32 = arith.constant 0 : i32
    %c0_i32_0 = arith.constant 0 : i32
    return %c0_i32, %arg0 : i32, i32
  }
}

</mosaic_0001>

<bundles_post_ra>
// kernel: tpu_custom_call.1
= control target key start
LH: loop header
LB: loop body
LE: loop exit
PB: predicated region body
PF: predicated region fallthrough
CT: control target
= control target key end

     0   :  { %8 = vsyncpa [#allocation3], 0  ;;  %s2479_s0 = inlined_call_operand.hbm [shape: f32[40,512], index: 0, kind: input, shape index: {}]   ;;  %s2480_s1 = inlined_call_operand.hbm [shape: f32[32,40], index: 1, kind: input, shape index: {}]   ;;  %s2481_s2 = inlined_call_operand.vmem [shape: f32[8,1], index: 2, kind: input, shape index: {}]   ;;  %s2482_s3 = inlined_call_operand.hbm [shape: f32[8,512], index: 3, kind: output, shape index: {}]  }
   0x1   :  { %10 = vsyncpa [#allocation3 + $0x1], 0 }
   0x2   :  { %11 = vsyncpa [#allocation6], 0 }
   0x3   :  { %12 = vsyncpa [#allocation4], 0 }
   0x4   :  { %14 = vsyncpa [#allocation4 + $0x1], 0  ;;  %s1626_s12 = smov 0   ;;  %s1628_s13 = smov 0  }
   0x5   :  { %s1630_s14 = smov 0   ;;  %s1632_s15 = smov 0  }
   0x6 LB: > { %s1647_s16 = sadd.s32 4294967295, %s1588_s15   ;;  %s1257_s17 = sadd.s32 4294967294, %s1588_s15   ;;  %s1588_s15 = sphi %s1632_s15, %s2531_s15   ;;  %s1584_s14 = sphi %s1630_s14, %s2530_s14   ;;  %s1580_s13 = sphi %s1628_s13, %s2529_s13   ;;  %s1576_s12 = sphi %s1626_s12, %s2528_s12  }
   0x7   : > { %s1651_s18 = sadd.s32 1, %s1588_s15   ;;  %s27_s19 = sadd.s32 1, %s1584_s14 }
   0x8   : > { %s24_s20 = ssub.s32 %s1588_s15, %s1651_s18  ;;  %p34_p0 = scmp.ne.s32.totalorder %s1584_s14, %s1580_s13 }
   0x9   : > { %p25_p1 = scmp.eq.s32.totalorder %s24_s20, 0  ;;  %p35_p2 = scmp.eq.s32.totalorder %s1588_s15, 0 }
   0xa   : > { %p40_p3 = scmp.ne.s32.totalorder %s1580_s13, %s1576_s12  ;;  %p2483_p4 = scmp.eq.s32.totalorder %s1647_s16, 0 }
   0xb   : > { %s1663_s21 = scalar_select %p25_p1, %s1584_s14, %s27_s19  }
   0xc   : > { %p1665_p5 = por %p35_p2, %p34_p0  ;;  %p1671_p6 = por %p2483_p4, %p40_p3 }
   0xd   : > { %p106_p7 = scmp.eq.s32.totalorder %s1647_s16, 1  ;;  %p112_p8 = scmp.eq.s32.totalorder %s1257_s17, 1 }
   0xe   : > { %s2490_s22 = scalar_select %p1665_p5, 1, 0 }
   0xf   : > { %s2491_s23 = scalar_select %p1671_p6, 1, 0 }
  0x10   : > { %p1258_p9 = scmp.ge.s32.totalorder %s1588_s15, 1  ;;  %p119_p10 = scmp.lt.s32.totalorder %s1588_s15, 3 }
  0x11   : > { %p1678_p11 = por %p106_p7, %p34_p0  ;;  %p1682_p12 = por %p112_p8, %p40_p3 }
  0x12   : > { %p1686_p13 = pnand %p1258_p9, %p119_p10  ;;  %s1590_s27 = smov [#allocation5]  }
  0x13   : > { %s2492_s24 = scalar_select %p1678_p11, 1, 0 }
  0x14   : > { %s2493_s25 = scalar_select %p1682_p12, 1, 0 }
  0x15   : > { %s2494_s26 = scalar_select %p1686_p13, 1, 0 }
  0x16   : > { %p1365_p1 = pneg %p1686_p13  ;;  %s131_s28 = sshll.u32 %s1590_s27, 4  ;;  %s132_s28 = int_to_ptr.vmem [resolvable:$true] %s131_s28 }
  0x17   : > { %s148_s30 = sand.u32 1, %s1584_s14   ;;  %s1460_s6 = scalar_lea.hbm %s2480_s1, 512 }
  0x18   : > { %p1694_p2 = pnand %p1365_p1, %p2483_p4  ;;  %p1461_p7 = scmp.ne.s32.totalorder %s2480_s1, %s1460_s6 }
  0x19   : > { %p1467_p1 = scmp.lt.u32.totalorder %s1460_s6, %s2480_s1 }
  0x1a   : > { %p1462_p8 = pneg %p1694_p2 }
  0x1c   : > { %p1463_p9 = pnand %p1462_p8, %p1461_p7 }
  0x1e   : > { %p1464_p10 = pneg %p1463_p9 }
  0x20   : > { %p1469_p4 = pnand %p1467_p1, %p1464_p10 }
  0x22   : > { %1472 = shalt.err (!%p1469_p4)
}
  0x23   : > { %s1473_s11 = scalar_lea.vmem %s132_s28, 512  ;;  %p1481_p11 = scmp.lt.s32.totalorder %s132_s28, %s132_s28 }
  0x24   : > { %p1474_p0 = scmp.ne.s32.totalorder %s132_s28, %s1473_s11  ;;  %p1482_p6 = scmp.lt.s32.totalorder %s1473_s11, %s1473_s11 }
  0x26   : > { %p1476_p3 = pnand %p1474_p0, %p1462_p8  ;;  %p1483_p13 = por %p1482_p6, %p1481_p11 }
  0x28   : > { %p1477_p12 = pneg %p1476_p3 }
  0x2a   : > { %p1484_p5 = pnand %p1483_p13, %p1477_p12 }
  0x2c   : > { %1487 = shalt.err (!%p1484_p5)
}
  0x2d   : > { %s1591_s17 = smov 128   ;;  %s1592_s19 = smov 8  }
  0x2e   : > { %1368 = dma.hbm_to_vmem [thread:$0]  (!%p1694_p2), %s2480_s1, 512, %s132_s28, [#allocation6], %s1591_s17, %s1591_s17, %s1592_s19  }
  0x2f   : > { %p2496_p4 = scmp.ne.s32.totalorder %s2490_s22, 0  ;;  %p2497_p7 = scmp.lt.s32.totalorder %s1588_s15, 2 }
  0x30   : > { %s1323_s5 = smul.u32 80, %s148_s30  ;;  %s1307_s6 = sshll.u32 %s1588_s15, 8 }
  0x31   : > { %p1721_p0 = pnand %p2497_p7, %p2496_p4  ;;  %s1729_s9 = scalar_lea.hbm %s2479_s0, %s1307_s6 }
  0x32   : > { %s152_s28 = scalar_lea.vmem [#allocation2], %s1323_s5  ;;  %s1733_s29 = scalar_lea.sflag [#allocation3], %s148_s30 }
  0x33   : > { %s159_s22 = sshll.u32 %s152_s28, 4  ;;  %s1488_s10 = scalar_lea.hbm %s1729_s9, 1280  ;;  %s1731_s22 = int_to_ptr.vmem [resolvable:$true] %s159_s22 }
  0x34   : > { %p1489_p5 = scmp.ne.s32.totalorder %s1729_s9, %s1488_s10  ;;  %p1490_p6 = pneg %p1721_p0 }
  0x35   : > { %s1493_s19 = scalar_lea.hbm %s2479_s0, 2560  ;;  %p1494_p13 = scmp.lt.u32.totalorder %s1729_s9, %s2479_s0 }
  0x36   : > { %p1491_p11 = pnand %p1490_p6, %p1489_p5  ;;  %p1495_p2 = scmp.lt.u32.totalorder %s1493_s19, %s1488_s10 }
  0x37   : > { %p1497_p8 = scmp.lt.u32.totalorder %s1488_s10, %s1729_s9 }
  0x38   : > { %p1492_p12 = pneg %p1491_p11  ;;  %p1496_p3 = por %p1495_p2, %p1494_p13 }
  0x3a   : > { %p1498_p9 = por %p1497_p8, %p1496_p3 }
  0x3c   : > { %p1499_p10 = pnand %p1498_p9, %p1492_p12 }
  0x3e   : > { %1502 = shalt.err (!%p1499_p10)
}
  0x3f   : > { %s1503_s30 = scalar_lea.vmem %s1731_s22, 1280  ;;  %s1593_s5 = smov [#allocation2]  }
  0x40   : > { %p1504_p1 = scmp.ne.s32.totalorder %s1731_s22, %s1503_s30  ;;  %s1508_s6 = sshll.u32 %s1593_s5, 4  ;;  %s1509_s6 = int_to_ptr.vmem [resolvable:$false] %s1508_s6 }
  0x41   : > { %s1510_s7 = scalar_lea.vmem %s1509_s6, 2560  ;;  %p1511_p5 = scmp.lt.s32.totalorder %s1731_s22, %s1509_s6 }
  0x42   : > { %p1506_p4 = pnand %p1504_p1, %p1490_p6  ;;  %p1512_p11 = scmp.lt.s32.totalorder %s1510_s7, %s1503_s30 }
  0x44   : > { %p1507_p7 = pneg %p1506_p4  ;;  %p1513_p13 = por %p1512_p11, %p1511_p5 }
  0x46   : > { %p1514_p2 = pnand %p1513_p13, %p1507_p7 }
  0x48   : > { %1517 = shalt.err (!%p1514_p2)
}
  0x49   : > { %s1594_s8 = smov 512   ;;  %s1595_s28 = smov 256  }
  0x4a   : > { %s1596_s10 = smov 16   ;;  %p2499_p6 = scmp.ne.s32.totalorder %s2494_s26, 0 }
  0x4b   : > { %1372 = dma.hbm_to_vmem [thread:$0]  (!%p1721_p0), %s1729_s9, 1280, %s1731_s22, %s1733_s29, %s1594_s8, %s1595_s28, %s1596_s10  }
  0x4c   : > { %171 = sbr.rel (%p2499_p6) target bundleno = 546 (0x222), region = 32  ;;  %s1764_s11 = sand.u32 (!%p2499_p6), 1, %s1580_s13  }
  0x4d   : > { %s1324_s17 = smul.u32 (!%p2499_p6), 80, %s1764_s11  ;;  %s174_s19 = scalar_lea.sflag (!%p2499_p6), [#allocation3], %s1764_s11 }
  0x4e   : > { %p2500_p12 = scmp.ne.s32.totalorder (!%p2499_p6), %s2491_s23, 0 }
  0x4f   : > { %s1768_s20 = scalar_lea.vmem (!%p2499_p6), [#allocation2], %s1324_s17 }
  0x53   : > { %1563 = dma.done.wait (%p2500_p12), %s174_s19, 1280  }
  0x54   : > { %1565 = vsyncadd (%p2500_p12), %s174_s19, 4294966016  ;;  %p2501_p0 = scmp.eq.s32.totalorder %s1647_s16, 0 }
  0x56   : > { %1567 = dma.done.wait (%p2501_p0), [#allocation6], 512   ;;  %p2502_p3 = pmov %p2501_p0 }
  0x57   : > { %v1597_v0 = vmov 0.0   ;;  %v1598_v1 = vmov 0   ;;  %v211_v2 = vld [vmem:[%s1768_s20 + $0x8] sm:$0xff]  ;;  %v213_v3 = vld [vmem:[%s1768_s20 + $0x18] sm:$0xff]  ;;  %v210_v4 = vld [vmem:[%s1768_s20] sm:$0xff]  ;;  %vm220_vm0 = vcmask 326656  }
  0x58   : > { %1569 = vsyncadd (%p2502_p3), [#allocation6], 4294966784  ;;  %297 = vmatprep.mubr.f32.mxu0 %v1597_v0  ;;  %309 = vmatprep.mubr.f32.mxu1 %v1597_v0  ;;  %v1309_v5 = vpack.c.bf16 %v213_v3, %v211_v2  ;;  %v212_v6 = vld [vmem:[%s1768_s20 + $0x10] sm:$0xff]  ;;  %v215_v7 = vld [vmem:[%s1768_s20 + $0x28] sm:$0xff]  ;;  %v1599_v54 = vmov 683565275  }
  0x59   : > { %1427 = vset.pattern.permute.xlu0 %v1598_v1  ;;  %v217_v8 = vld [vmem:[%s1768_s20 + $0x38] sm:$0xff]  ;;  %v1311_v9 = vpack.c.bf16 %v212_v6, %v210_v4  ;;  %v214_v11 = vld [vmem:[%s1768_s20 + $0x20] sm:$0xff]  ;;  %v216_v12 = vld [vmem:[%s1768_s20 + $0x30] sm:$0xff]  ;;  %v1600_v58 = vmov 2475754826   ;;  %s1265_s4 = sshll.u32 %s1764_s11, 4 }
  0x5a   : > { %v1313_v10 = vpack.c.bf16 %v217_v8, %v215_v7  ;;  %1310 = vmatprep.subr.bf16.mxu0 %v1309_v5  ;;  %1317 = vmatprep.subr.bf16.mxu1 %v1309_v5  ;;  %v1315_v13 = vpack.c.bf16 %v216_v12, %v214_v11  ;;  %v1152_v14 = vld [vmem:[%s2481_s2] sm:$0xff]  ;;  %v219_v15 = vld [vmem:[%s1768_s20 + $0x48] sm:$0xff]  ;;  %v208_v18 = vld [vmem:[#allocation5 + $0x10] sm:$0xff]  ;;  %v1601_v60 = vmov 2131351028   ;;  %s2394_s9 = scalar_lea.vmem [#allocation7], %s1265_s4 }
  0x5b   : > { %1312 = vmatpush1.bf16.msra.mxu0 %v1311_v9  ;;  %1320 = vmatpush1.bf16.msra.mxu1 %v1311_v9  ;;  %v218_v16 = vld [vmem:[%s1768_s20 + $0x40] sm:$0xff]  ;;  %v207_v19 = vld [vmem:[#allocation5 + $0x8] sm:$0xff]  ;;  %v209_v20 = vld [vmem:[#allocation5 + $0x18] sm:$0xff]  ;;  %v1602_v62 = vmov 2102212464   ;;  %s1308_s22 = sshll.u32 %s1647_s16, 8 }
  0x5c   : > { %1314 = vmatprep.subr.bf16.mxu0 %v1313_v10  ;;  %1318 = vmatprep.subr.bf16.mxu1 %v1313_v10  ;;  %v206_v17 = vld [vmem:[#allocation5] sm:$0xff]  ;;  %v1604_v7 = vmov 1326507024   ;;  %s1177_s29 = sshll.u32 %s2394_s9, 4  ;;  %s2434_s5 = scalar_lea.hbm %s2482_s3, %s1308_s22  ;;  %s2436_s29 = int_to_ptr.vmem [resolvable:$true] %s1177_s29 }
  0x5d   : > { %1155 = vperm.xlu0 %1427, %v1152_v14   ;;  %s1163_s6 = scalar_lea.sflag [#allocation4], %s1764_s11  ;;  %s1518_s7 = scalar_lea.vmem %s2436_s29, 256 }
  0x5e   : > { %p1519_p8 = scmp.ne.s32.totalorder %s2436_s29, %s1518_s7  ;;  %p2525_p9 = scmp.ne.s32.totalorder %s2492_s24, 0 }
  0x5f   : > { %1316 = vmatpush1.bf16.msra.mxu0 %v1315_v13  ;;  %1321 = vmatpush1.bf16.msra.mxu1 %v1315_v13  ;;  %s1605_s16 = smov [#allocation7]  }
  0x60   : > { %241 = vmatprep.subr.mxu0 %v219_v15  ;;  %1319 = vmatprep.subr.mxu1 %v219_v15  ;;  %p1520_p10 = pnand %p1519_p8, %p2525_p9  ;;  %s1522_s8 = sshll.u32 %s1605_s16, 4  ;;  %s1523_s8 = int_to_ptr.vmem [resolvable:$false] %s1522_s8 }
  0x61   : > { %s1524_s28 = scalar_lea.vmem %s1523_s8, 512  ;;  %p1525_p4 = scmp.lt.s32.totalorder %s2436_s29, %s1523_s8 }
  0x62   : > { %p1521_p1 = pneg %p1520_p10  ;;  %p1526_p7 = scmp.lt.s32.totalorder %s1524_s28, %s1518_s7 }
  0x63   : > { %242 = vmatpush1.msra.mxu0 %v218_v16  ;;  %1322 = vmatpush1.msra.mxu1 %v218_v16 }
  0x64   : > { %1266 = vmatmul.mubr.msk.f32.vlgmr.msra.gmra.mrb[0].mxu0 %vm220_vm0, %v206_v17  ;;  %1268 = vmatmul.mubr.msk.f32.vlgmr.msra.gmra.mrb[0].mxu1 %vm220_vm0, %v208_v18  ;;  %p1527_p5 = por %p1526_p7, %p1525_p4 }
  0x65   : > { %303 = vmatprep.mubr.f32.mxu0 %v1597_v0  ;;  %315 = vmatprep.mubr.f32.mxu1 %v1597_v0  ;;  %v1603_v0 = vmov 920167782  }
  0x66   : > { %p1528_p11 = pnand %p1527_p5, %p1521_p1 }
  0x68   : > { %1267 = vmatmul.mubr.msk.f32.gmra.mrb[2].mxu0 %vm220_vm0, %v207_v19  ;;  %1269 = vmatmul.mubr.msk.f32.gmra.mrb[2].mxu1 %vm220_vm0, %v209_v20 }
 0x137   : > { %v1791_v21 = vpop.f32.mrb[0].mxu0  ;;  %v1793_v22 = vpop.f32.mrb[0].mxu1 }
 0x138   : > { %v322_v23 = vand.u32 2147483647, %v1791_v21  ;;  %v325_v24 = vand.u32 2139095040, %v1791_v21  ;;  %v734_v25 = vand.u32 2147483647, %v1793_v22  ;;  %v737_v26 = vand.u32 2139095040, %v1793_v22 }
 0x139   : > { %v1799_v27 = vpop.f32.mrb[1].mxu0  ;;  %v1801_v28 = vpop.f32.mrb[1].mxu1 }
 0x13a   : > { %v326_v29 = vshrl.u32 %v325_v24, 23  ;;  %v329_v30 = vand.u32 8388607, %v322_v23  ;;  %v738_v31 = vshrl.u32 %v737_v26, 23  ;;  %v741_v32 = vand.u32 8388607, %v734_v25 }
 0x13b   : > { %v428_v33 = vand.u32 2139095040, %v1799_v27  ;;  %v1808_v37 = vpop.f32.mrb[2].mxu0  ;;  %v1810_v38 = vpop.f32.mrb[2].mxu1 }
 0x13c   : > { %v1270_v34 = vadd.s32 4294967169, %v326_v29  ;;  %v1286_v35 = vadd.s32 4294967169, %v738_v31  ;;  %v330_v40 = vor.u32 8388608, %v329_v30  ;;  %v742_v41 = vor.u32 8388608, %v741_v32  ;;  %v1812_v44 = vpop.f32.mrb[3].mxu0  ;;  %v1814_v45 = vpop.f32.mrb[3].mxu1 }
 0x13d   : > { %v429_v36 = vshrl.u32 %v428_v33, 23 }
 0x13e   : > { %v332_v39 = vadd.s32 1, %v1270_v34  ;;  %v744_v42 = vadd.s32 1, %v1286_v35  ;;  %v1816_v50 = vshll.u32 %v330_v40, 8  ;;  %v1818_v51 = vshll.u32 %v742_v41, 8 }
 0x13f   : > { %v1274_v43 = vadd.s32 4294967169, %v429_v36 }
 0x140   : > { %vm333_vm1 = vcmp.gt.s32.totalorder %v332_v39, 0  ;;  %vm745_vm2 = vcmp.gt.s32.totalorder %v744_v42, 0 }
 0x141   : > { %v334_v46 = vsel %vm333_vm1, %v332_v39, 0  ;;  %v746_v49 = vsel %vm745_vm2, %v744_v42, 0  ;;  %v1820_v52 = vadd.s32 1, %v1274_v43 }
 0x142   : > { %v335_v47 = vshrl.u32 %v334_v46, 5  ;;  %v336_v48 = vand.u32 31, %v334_v46  ;;  %v1823_v56 = vshrl.u32 %v746_v49, 5  ;;  %v748_v57 = vand.u32 31, %v746_v49 }
 0x143   : > { %vm436_vm6 = vcmp.gt.s32.totalorder %v1820_v52, 0 }
 0x144   : > { %v337_v53 = vsub.s32 32, %v336_v48  ;;  %v339_v55 = vshll.u32 %v1599_v54, %v336_v48  ;;  %v342_v59 = vshll.u32 %v1600_v58, %v336_v48  ;;  %v345_v61 = vshll.u32 %v1601_v60, %v336_v48 }
 0x145   : > { %v348_v63 = vshll.u32 %v1602_v62, %v336_v48  ;;  %v351_v1 = vshll.u32 %v1603_v0, %v336_v48  ;;  %vm354_vm3 = vcmp.lt.s32.totalorder %v335_v47, 1  ;;  %vm356_vm4 = vcmp.lt.s32.totalorder %v335_v47, 3 }
 0x146   : > { %v340_v2 = vshrl.u32 %v1600_v58, %v337_v53  ;;  %v343_v3 = vshrl.u32 %v1601_v60, %v337_v53  ;;  %v346_v4 = vshrl.u32 %v1602_v62, %v337_v53  ;;  %v338_v5 = vshrl.u32 %v1599_v54, %v337_v53 }
 0x147   : > { %v349_v6 = vshrl.u32 %v1603_v0, %v337_v53  ;;  %v352_v8 = vshrl.u32 %v1604_v7, %v337_v53  ;;  %v749_v12 = vsub.s32 32, %v748_v57  ;;  %vm357_vm5 = vcmp.lt.s32.totalorder %v335_v47, 4 }
 0x148   : > { %v341_v9 = vor.u32 %v340_v2, %v339_v55  ;;  %v344_v10 = vor.u32 %v343_v3, %v342_v59  ;;  %v347_v11 = vor.u32 %v346_v4, %v345_v61  ;;  %v751_v15 = vshll.u32 %v1599_v54, %v748_v57 }
 0x149   : > { %v350_v13 = vor.u32 %v349_v6, %v348_v63  ;;  %v353_v14 = vor.u32 %v352_v8, %v351_v1  ;;  %v754_v29 = vshll.u32 %v1600_v58, %v748_v57  ;;  %vm355_vm7 = vcmp.lt.s32.totalorder %v335_v47, 2 }
 0x14a   : > { %v358_v16 = vsel %vm354_vm3, %v338_v5, %v341_v9  ;;  %v359_v17 = vsel %vm357_vm5, %v347_v11, 2102212464  ;;  %v362_v18 = vsel %vm354_vm3, %v341_v9, %v344_v10  ;;  %v366_v19 = vsel %vm354_vm3, %v344_v10, %v347_v11 }
 0x14b   : > { %v360_v20 = vsel %vm356_vm4, %v344_v10, %v359_v17  ;;  %v363_v24 = vsel %vm357_vm5, %v350_v13, 920167782  ;;  %v367_v26 = vsel %vm357_vm5, %v353_v14, 1326507024  ;;  %v752_v32 = vshrl.u32 %v1600_v58, %v749_v12 }
 0x14c   : > { %v364_v30 = vsel %vm356_vm4, %v347_v11, %v363_v24  ;;  %v368_v31 = vsel %vm356_vm4, %v350_v13, %v367_v26  ;;  %v361_v33 = vsel %vm355_vm7, %v358_v16, %v360_v20  ;;  %v755_v36 = vshrl.u32 %v1601_v60, %v749_v12 }
 0x14d   : > { %v365_v34 = vsel %vm355_vm7, %v362_v18, %v364_v30  ;;  %v369_v35 = vsel %vm355_vm7, %v366_v19, %v368_v31  ;;  %v753_v43 = vor.u32 %v752_v32, %v751_v15  ;;  %v757_v47 = vshll.u32 %v1601_v60, %v748_v57 }
 0x14e   : > { %v1847_v39 = vmul.u32.u64.low %v1816_v50, %v369_v35  ;;  %v1848_v40 = vmul.u32.u64.high %v1816_v50, %v369_v35, %v1847_v39  ;;  %v1851_v41 = vmul.u32.u64.low %v1816_v50, %v365_v34  ;;  %v1852_v42 = vmul.u32.u64.high %v1816_v50, %v365_v34, %v1851_v41 }
 0x14f   : > { %v756_v46 = vor.u32 %v755_v36, %v754_v29  ;;  %v758_v48 = vshrl.u32 %v1602_v62, %v749_v12  ;;  %v760_v49 = vshll.u32 %v1602_v62, %v748_v57  ;;  %v761_v53 = vshrl.u32 %v1603_v0, %v749_v12 }
 0x150   : > { %v763_v55 = vshll.u32 %v1603_v0, %v748_v57  ;;  %v764_v59 = vshrl.u32 %v1604_v7, %v749_v12  ;;  %v377_v61 = vmul.u32 %v1816_v50, %v361_v33  ;;  %v750_v63 = vshrl.u32 %v1599_v54, %v749_v12 }
 0x151   : > { %v759_v1 = vor.u32 %v758_v48, %v757_v47  ;;  %vm766_vm8 = vcmp.lt.s32.totalorder %v1823_v56, 1  ;;  %vm379_vm9 = vc.u32 %v1848_v40, %v1851_v41  ;;  %v380_v2 = vadd.s32 1, %v1852_v42 }
 0x152   : > { %v762_v3 = vor.u32 %v761_v53, %v760_v49  ;;  %vm767_vm10 = vcmp.lt.s32.totalorder %v1823_v56, 2  ;;  %v765_v4 = vor.u32 %v764_v59, %v763_v55  ;;  %vm768_vm11 = vcmp.lt.s32.totalorder %v1823_v56, 3 }
 0x153   : > { %vm769_vm12 = vcmp.lt.s32.totalorder %v1823_v56, 4  ;;  %v774_v57 = vsel %vm766_vm8, %v753_v43, %v756_v46  ;;  %v381_v50 = vsel %vm379_vm9, %v380_v2, %v1852_v42  ;;  %v778_v8 = vsel %vm766_vm8, %v756_v46, %v759_v1 }
 0x154   : > { %v771_v5 = vsel %vm769_vm12, %v759_v1, 2102212464  ;;  %v775_v6 = vsel %vm769_vm12, %v762_v3, 920167782  ;;  %v382_v9 = vadd.s32 %v381_v50, %v377_v61  ;;  %v770_v10 = vsel %vm766_vm8, %v750_v63, %v753_v43 }
 0x155   : > { %v776_v11 = vsel %vm768_vm11, %v759_v1, %v775_v6  ;;  %v779_v12 = vsel %vm769_vm12, %v765_v4, 1326507024  ;;  %v772_v13 = vsel %vm768_vm11, %v756_v46, %v771_v5  ;;  %v437_v16 = vsel %vm436_vm6, %v1820_v52, 0 }
 0x156   : > { %v777_v14 = vsel %vm767_vm10, %v774_v57, %v776_v11  ;;  %v780_v15 = vsel %vm768_vm11, %v762_v3, %v779_v12  ;;  %v383_v17 = vadd.s32 536870912, %v382_v9  ;;  %v425_v29 = vand.u32 2147483647, %v1799_v27 }
 0x157   : > { %v781_v18 = vsel %vm767_vm10, %v778_v8, %v780_v15  ;;  %v1879_v19 = vmul.u32.u64.low %v1818_v51, %v777_v14  ;;  %v1880_v20 = vmul.u32.u64.high %v1818_v51, %v777_v14, %v1879_v19  ;;  %v773_v52 = vsel %vm767_vm10, %v770_v10, %v772_v13 }
 0x158   : > { %v1884_v24 = vmul.u32.u64.low %v1818_v51, %v781_v18  ;;  %v1885_v26 = vmul.u32.u64.high %v1818_v51, %v781_v18, %v1884_v24  ;;  %v1888_v30 = vshrl.u32 %v383_v17, 30  ;;  %v439_v31 = vand.u32 31, %v437_v16 }
 0x159   : > { %v840_v32 = vand.u32 2139095040, %v1801_v28  ;;  %v792_v34 = vadd.s32 1, %v1880_v20  ;;  %v789_v36 = vmul.u32 %v1818_v51, %v773_v52  ;;  %v432_v39 = vand.u32 8388607, %v425_v29 }
 0x15a   : > { %v385_v33 = vshll.u32 %v1888_v30, 30  ;;  %v440_v35 = vsub.s32 32, %v439_v31  ;;  %vm791_vm13 = vc.u32 %v1885_v26, %v1879_v19  ;;  %v442_v43 = vshll.u32 %v1599_v54, %v439_v31 }
 0x15b   : > { %v793_v56 = vsel %vm791_vm13, %v792_v34, %v1880_v20  ;;  %v841_v46 = vshrl.u32 %v840_v32, 23  ;;  %v445_v49 = vshll.u32 %v1600_v58, %v439_v31  ;;  %v438_v55 = vshrl.u32 %v437_v16, 5 }
 0x15c   : > { %v1900_v42 = vsub.s32 %v382_v9, %v385_v33  ;;  %v794_v47 = vadd.s32 %v793_v56, %v789_v36  ;;  %v443_v48 = vshrl.u32 %v1600_v58, %v440_v35  ;;  %v446_v51 = vshrl.u32 %v1601_v60, %v440_v35 }
 0x15d   : > { %v448_v59 = vshll.u32 %v1601_v60, %v439_v31  ;;  %v449_v61 = vshrl.u32 %v1602_v62, %v440_v35  ;;  %v451_v57 = vshll.u32 %v1602_v62, %v439_v31  ;;  %v452_v50 = vshrl.u32 %v1603_v0, %v440_v35 }
 0x15e   : > { %v388_v53 = vsub.s32 0, %v1900_v42  ;;  %v795_v63 = vadd.s32 536870912, %v794_v47  ;;  %v444_v1 = vor.u32 %v443_v48, %v442_v43  ;;  %v447_v2 = vor.u32 %v446_v51, %v445_v49 }
 0x15f   : > { %v450_v4 = vor.u32 %v449_v61, %v448_v59  ;;  %v454_v6 = vshll.u32 %v1603_v0, %v439_v31  ;;  %v455_v8 = vshrl.u32 %v1604_v7, %v440_v35  ;;  %v1290_v9 = vadd.s32 4294967169, %v841_v46 }
 0x160   : > { %v1271_v3 = vmin.u32 %v388_v53, %v1900_v42  ;;  %v1913_v5 = vshrl.u32 %v795_v63, 30  ;;  %v433_v10 = vor.u32 8388608, %v432_v39  ;;  %v453_v11 = vor.u32 %v452_v50, %v451_v57 }
 0x161   : > { %vm457_vm14 = vcmp.lt.s32.totalorder %v438_v55, 1  ;;  %v456_v13 = vor.u32 %v455_v8, %v454_v6  ;;  %vm459_vm15 = vcmp.lt.s32.totalorder %v438_v55, 3  ;;  %vm460_vm0 = vcmp.lt.s32.totalorder %v438_v55, 4 }
 0x162   : > { %v797_v12 = vshll.u32 %v1913_v5, 30  ;;  %v390_v14 = vclz %v1271_v3  ;;  %v465_v15 = vsel %vm457_vm14, %v444_v1, %v447_v2  ;;  %v466_v16 = vsel %vm460_vm0, %v453_v11, 920167782 }
 0x163   : > { %v469_v17 = vsel %vm457_vm14, %v447_v2, %v450_v4  ;;  %vm458_vm1 = vcmp.lt.s32.totalorder %v438_v55, 2  ;;  %v467_v18 = vsel %vm459_vm15, %v450_v4, %v466_v16  ;;  %v470_v20 = vsel %vm460_vm0, %v456_v13, 1326507024 }
 0x164   : > { %v847_v24 = vadd.s32 1, %v1290_v9  ;;  %v1921_v52 = vsub.s32 %v794_v47, %v797_v12  ;;  %v441_v31 = vshrl.u32 %v1599_v54, %v440_v35  ;;  %v462_v32 = vsel %vm460_vm0, %v450_v4, 2102212464 }
 0x165   : > { %v471_v33 = vsel %vm459_vm15, %v453_v11, %v470_v20  ;;  %v468_v34 = vsel %vm458_vm1, %v465_v15, %v467_v18  ;;  %v473_v39 = vshll.u32 %v433_v10, 8  ;;  %v1272_v56 = vadd.s32 4294967294, %v390_v14 }
 0x166   : > { %v472_v36 = vsel %vm458_vm1, %v469_v17, %v471_v33  ;;  %v461_v43 = vsel %vm457_vm14, %v441_v31, %v444_v1  ;;  %v463_v46 = vsel %vm459_vm15, %v447_v2, %v462_v32  ;;  %vm848_vm2 = vcmp.gt.s32.totalorder %v847_v24, 0 }
 0x167   : > { %v1929_v48 = vmul.u32.u64.low %v473_v39, %v472_v36  ;;  %v1930_v49 = vmul.u32.u64.high %v473_v39, %v472_v36, %v1929_v48  ;;  %v800_v47 = vsub.s32 0, %v1921_v52  ;;  %v849_v53 = vsel %vm848_vm2, %v847_v24, 0 }
 0x168   : > { %v1933_v35 = vmul.u32.u64.low %v473_v39, %v468_v34  ;;  %v1934_v51 = vmul.u32.u64.high %v473_v39, %v468_v34, %v1933_v35  ;;  %vm1273_vm3 = vcmp.lt.s32.totalorder %v1272_v56, 0  ;;  %v464_v59 = vsel %vm458_vm1, %v461_v43, %v463_v46 }
 0x169   : > { %v851_v61 = vand.u32 31, %v849_v53  ;;  %v1287_v63 = vmin.u32 %v800_v47, %v1921_v52  ;;  %v393_v2 = vsel %vm1273_vm3, 0, %v1272_v56  ;;  %v480_v3 = vmul.u32 %v473_v39, %v464_v59 }
 0x16a   : > { %vm482_vm4 = vc.u32 %v1930_v49, %v1933_v35  ;;  %v483_v1 = vadd.s32 1, %v1934_v51  ;;  %v2488_v4 = vand.u32 2147483647, %v1801_v28  ;;  %v398_v8 = vsub.s32 4294967266, %v393_v2 }
 0x16b   : > { %v852_v50 = vsub.s32 32, %v851_v61  ;;  %v802_v9 = vclz %v1287_v63  ;;  %v394_v55 = vsub.s32 32, %v393_v2  ;;  %v854_v12 = vshll.u32 %v1599_v54, %v851_v61 }
 0x16c   : > { %v484_v57 = vsel %vm482_vm4, %v483_v1, %v1934_v51  ;;  %v844_v11 = vand.u32 8388607, %v2488_v4  ;;  %v857_v14 = vshll.u32 %v1600_v58, %v851_v61  ;;  %v863_v16 = vshll.u32 %v1602_v62, %v851_v61 }
 0x16d   : > { %v485_v6 = vadd.s32 %v484_v57, %v480_v3  ;;  %v855_v13 = vshrl.u32 %v1600_v58, %v852_v50  ;;  %v858_v15 = vshrl.u32 %v1601_v60, %v852_v50  ;;  %v860_v18 = vshll.u32 %v1601_v60, %v851_v61 }
 0x16e   : > { %v861_v20 = vshrl.u32 %v1602_v62, %v852_v50  ;;  %v864_v24 = vshrl.u32 %v1603_v0, %v852_v50  ;;  %v399_v31 = vadd.s32 127, %v398_v8  ;;  %v1288_v32 = vadd.s32 4294967294, %v802_v9 }
 0x16f   : > { %v486_v10 = vadd.s32 536870912, %v485_v6  ;;  %v866_v33 = vshll.u32 %v1603_v0, %v851_v61  ;;  %v867_v34 = vshrl.u32 %v1604_v7, %v852_v50  ;;  %v378_v36 = vadd.s32 %v1851_v41, %v1848_v40 }
 0x170   : > { %v850_v56 = vshrl.u32 %v849_v53, 5  ;;  %v845_v43 = vor.u32 8388608, %v844_v11  ;;  %v856_v46 = vor.u32 %v855_v13, %v854_v12  ;;  %v859_v48 = vor.u32 %v858_v15, %v857_v14 }
 0x171   : > { %v1951_v17 = vshrl.u32 %v486_v10, 30  ;;  %v865_v47 = vor.u32 %v864_v24, %v863_v16  ;;  %v395_v51 = vshll.u32 %v1900_v42, %v393_v2  ;;  %v862_v63 = vor.u32 %v861_v20, %v860_v18 }
 0x172   : > { %v396_v1 = vshrl.u32 %v378_v36, %v394_v55  ;;  %v400_v3 = vshll.u32 %v399_v31, 23  ;;  %vm1289_vm5 = vcmp.lt.s32.totalorder %v1288_v32, 0  ;;  %v868_v61 = vor.u32 %v867_v34, %v866_v33 }
 0x173   : > { %v488_v39 = vshll.u32 %v1951_v17, 30  ;;  %v853_v40 = vshrl.u32 %v1599_v54, %v852_v50  ;;  %vm869_vm6 = vcmp.lt.s32.totalorder %v850_v56, 1  ;;  %vm872_vm7 = vcmp.lt.s32.totalorder %v850_v56, 4 }
 0x174   : > { %vm871_vm8 = vcmp.lt.s32.totalorder %v850_v56, 3  ;;  %v877_v41 = vsel %vm869_vm6, %v856_v46, %v859_v48  ;;  %v878_v53 = vsel %vm872_vm7, %v865_v47, 920167782  ;;  %v885_v8 = vshll.u32 %v845_v43, 8 }
 0x175   : > { %v1962_v59 = vsub.s32 %v485_v6, %v488_v39  ;;  %v805_v9 = vsel %vm1289_vm5, 0, %v1288_v32  ;;  %vm870_vm9 = vcmp.lt.s32.totalorder %v850_v56, 2  ;;  %v874_v42 = vsel %vm872_vm7, %v862_v63, 2102212464 }
 0x176   : > { %v879_v2 = vsel %vm871_vm8, %v862_v63, %v878_v53  ;;  %v881_v10 = vsel %vm869_vm6, %v859_v48, %v862_v63  ;;  %v882_v11 = vsel %vm872_vm7, %v868_v61, 1326507024  ;;  %v401_v12 = vor.u32 4788187, %v400_v3 }
 0x177   : > { %v491_v57 = vsub.s32 0, %v1962_v59  ;;  %v880_v55 = vsel %vm870_vm9, %v877_v41, %v879_v2  ;;  %v873_v13 = vsel %vm869_vm6, %v853_v40, %v856_v46  ;;  %v883_v50 = vsel %vm871_vm8, %v865_v47, %v882_v11 }
 0x178   : > { %v531_v14 = vand.u32 2139095040, %v1808_v37  ;;  %v875_v15 = vsel %vm871_vm8, %v859_v48, %v874_v42  ;;  %v884_v16 = vsel %vm870_vm9, %v881_v10, %v883_v50  ;;  %v397_v24 = vor.u32 %v396_v1, %v395_v51 }
 0x179   : > { %v1275_v6 = vmin.u32 %v491_v57, %v1962_v59  ;;  %v1973_v18 = vmul.u32.u64.low %v885_v8, %v880_v55  ;;  %v1974_v20 = vmul.u32.u64.high %v885_v8, %v880_v55, %v1973_v18  ;;  %v810_v31 = vsub.s32 4294967266, %v805_v9 }
 0x17a   : > { %v1977_v32 = vmul.u32.u64.low %v885_v8, %v884_v16  ;;  %v1978_v33 = vmul.u32.u64.high %v885_v8, %v884_v16, %v1977_v32  ;;  %vm324_vm10 = vcmp.lt.s32.totalorder %v1791_v21, 0  ;;  %v532_v36 = vshrl.u32 %v531_v14, 23 }
 0x17b   : > { %v493_v34 = vclz %v1275_v6  ;;  %v408_v39 = vsub.s32 4, %v1888_v30  ;;  %vm736_vm11 = vcmp.lt.s32.totalorder %v1793_v22, 0  ;;  %v876_v43 = vsel %vm870_vm9, %v873_v13, %v875_v15 }
 0x17c   : > { %v528_v46 = vand.u32 2147483647, %v1808_v37  ;;  %v402_v48 = vand.u32 2147483647, %v401_v12  ;;  %v806_v47 = vsub.s32 32, %v805_v9  ;;  %v895_v51 = vadd.s32 1, %v1974_v20 }
 0x17d   : > { %v1278_v63 = vadd.s32 4294967169, %v532_v36  ;;  %v404_v1 = vcvt.s32.f32 %v397_v24  ;;  %v790_v3 = vadd.s32 %v1879_v19, %v1885_v26  ;;  %v811_v61 = vadd.s32 127, %v810_v31 }
 0x17e   : > { %v943_v57 = vand.u32 2139095040, %v1810_v38  ;;  %v1276_v40 = vadd.s32 4294967294, %v493_v34  ;;  %v892_v41 = vmul.u32 %v885_v8, %v876_v43  ;;  %vm894_vm12 = vc.u32 %v1978_v33, %v1973_v18 }
 0x17f   : > { %v538_v56 = vadd.s32 1, %v1278_v63  ;;  %vm1993_vm13 = vcmp.le.f32.partialorder %v322_v23, 0.7853982  ;;  %v2000_v42 = vsel %vm324_vm10, %v408_v39, %v1888_v30  ;;  %v820_v19 = vsub.s32 4, %v1913_v5 }
 0x180   : > { %v896_v26 = vsel %vm894_vm12, %v895_v51, %v1974_v20  ;;  %v2004_v8 = vmul.f32 %v404_v1, %v402_v48  ;;  %v808_v2 = vshrl.u32 %v790_v3, %v806_v47  ;;  %v812_v55 = vshll.u32 %v811_v61, 23 }
 0x181   : > { %v897_v6 = vadd.s32 %v896_v26, %v892_v41  ;;  %vm539_vm14 = vcmp.gt.s32.totalorder %v538_v56, 0  ;;  %v535_v23 = vand.u32 8388607, %v528_v46  ;;  %v944_v11 = vshrl.u32 %v943_v57, 23 }
 0x182   : > { %v540_v10 = vsel %vm539_vm14, %v538_v56, 0  ;;  %v807_v12 = vshll.u32 %v1921_v52, %v805_v9  ;;  %vm1277_vm15 = vcmp.lt.s32.totalorder %v1276_v40, 0  ;;  %v2015_v14 = vsel %vm736_vm11, %v820_v19, %v1913_v5 }
 0x183   : > { %v898_v30 = vadd.s32 536870912, %v897_v6  ;;  %v542_v13 = vand.u32 31, %v540_v10  ;;  %v406_v15 = vxor.u32 2147483648, %v2004_v8  ;;  %v813_v52 = vor.u32 4788187, %v812_v55 }
 0x184   : > { %v2018_v16 = vor.u32 %v808_v2, %v807_v12  ;;  %v2022_v9 = vsel %vm1277_vm15, 0, %v1276_v40  ;;  %v536_v31 = vor.u32 8388608, %v535_v23  ;;  %v1294_v32 = vadd.s32 4294967169, %v944_v11 }
 0x185   : > { %v2020_v20 = vshrl.u32 %v898_v30, 30  ;;  %v543_v24 = vsub.s32 32, %v542_v13  ;;  %v545_v36 = vshll.u32 %v1599_v54, %v542_v13  ;;  %v548_v5 = vshll.u32 %v1600_v58, %v542_v13 }
 0x186   : > { %v551_v48 = vshll.u32 %v1601_v60, %v542_v13  ;;  %v541_v1 = vshrl.u32 %v540_v10, 5  ;;  %v554_v3 = vshll.u32 %v1602_v62, %v542_v13  ;;  %v557_v56 = vshll.u32 %v1603_v0, %v542_v13 }
 0x187   : > { %v900_v34 = vshll.u32 %v2020_v20, 30  ;;  %v546_v39 = vshrl.u32 %v1600_v58, %v543_v24  ;;  %v549_v43 = vshrl.u32 %v1601_v60, %v543_v24  ;;  %v552_v47 = vshrl.u32 %v1602_v62, %v543_v24 }
 0x188   : > { %v555_v51 = vshrl.u32 %v1603_v0, %v543_v24  ;;  %v558_v61 = vshrl.u32 %v1604_v7, %v543_v24  ;;  %vm2039_vm0 = vcmp.le.f32.partialorder %v734_v25, 0.7853982  ;;  %v816_v26 = vcvt.s32.f32 %v2018_v16 }
 0x189   : > { %v2032_v63 = vsub.s32 %v897_v6, %v900_v34  ;;  %v547_v57 = vor.u32 %v546_v39, %v545_v36  ;;  %v550_v40 = vor.u32 %v549_v43, %v548_v5  ;;  %v553_v41 = vor.u32 %v552_v47, %v551_v48 }
 0x18a   : > { %v501_v2 = vsub.s32 4294967266, %v2022_v9  ;;  %v556_v55 = vor.u32 %v555_v51, %v554_v3  ;;  %v544_v23 = vshrl.u32 %v1599_v54, %v543_v24  ;;  %v559_v10 = vor.u32 %v558_v61, %v557_v56 }
 0x18b   : > { %v903_v6 = vsub.s32 0, %v2032_v63  ;;  %v576_v11 = vshll.u32 %v536_v31, 8  ;;  %v950_v12 = vadd.s32 1, %v1294_v32  ;;  %vm560_vm1 = vcmp.lt.s32.totalorder %v541_v1, 1 }
 0x18c   : > { %vm561_vm2 = vcmp.lt.s32.totalorder %v541_v1, 2  ;;  %vm563_vm3 = vcmp.lt.s32.totalorder %v541_v1, 4  ;;  %vm562_vm4 = vcmp.lt.s32.totalorder %v541_v1, 3  ;;  %v568_v13 = vsel %vm560_vm1, %v547_v57, %v550_v40 }
 0x18d   : > { %v1291_v30 = vmin.u32 %v903_v6, %v2032_v63  ;;  %v565_v25 = vsel %vm563_vm3, %v553_v41, 2102212464  ;;  %v569_v34 = vsel %vm563_vm3, %v556_v55, 920167782  ;;  %v564_v36 = vsel %vm560_vm1, %v544_v23, %v547_v57 }
 0x18e   : > { %v566_v39 = vsel %vm562_vm4, %v550_v40, %v565_v25  ;;  %v570_v5 = vsel %vm562_vm4, %v553_v41, %v569_v34  ;;  %v814_v43 = vand.u32 2147483647, %v813_v52  ;;  %v572_v24 = vsel %vm560_vm1, %v550_v40, %v553_v41 }
 0x18f   : > { %v905_v16 = vclz %v1291_v30  ;;  %v571_v48 = vsel %vm561_vm2, %v568_v13, %v570_v5  ;;  %v573_v47 = vsel %vm563_vm3, %v559_v10, 1326507024  ;;  %v2487_v3 = vand.u32 2147483647, %v1810_v38 }
 0x190   : > { %v574_v31 = vsel %vm562_vm4, %v556_v55, %v573_v47  ;;  %v2049_v32 = vmul.u32.u64.low %v576_v11, %v571_v48  ;;  %v2050_v51 = vmul.u32.u64.high %v576_v11, %v571_v48, %v2049_v32  ;;  %v502_v61 = vadd.s32 127, %v501_v2 }
 0x191   : > { %v567_v56 = vsel %vm561_vm2, %v564_v36, %v566_v39  ;;  %v575_v6 = vsel %vm561_vm2, %v572_v24, %v574_v31  ;;  %vm951_vm5 = vcmp.gt.s32.totalorder %v950_v12, 0  ;;  %v1292_v57 = vadd.s32 4294967294, %v905_v16 }
 0x192   : > { %v2056_v23 = vmul.u32.u64.low %v576_v11, %v575_v6  ;;  %v2057_v52 = vmul.u32.u64.high %v576_v11, %v575_v6, %v2056_v23  ;;  %v952_v30 = vsel %vm951_vm5, %v950_v12, 0  ;;  %v407_v40 = vsel %vm324_vm10, %v406_v15, %v2004_v8 }
 0x193   : > { %v481_v2 = vadd.s32 %v1933_v35, %v1930_v49  ;;  %v954_v55 = vand.u32 31, %v952_v30  ;;  %v2067_v1 = vmul.f32 %v816_v26, %v814_v43  ;;  %v497_v10 = vsub.s32 32, %v2022_v9 }
 0x194   : > { %v586_v25 = vadd.s32 1, %v2050_v51  ;;  %v947_v12 = vand.u32 8388607, %v2487_v3  ;;  %v498_v8 = vshll.u32 %v1962_v59, %v2022_v9  ;;  %v503_v15 = vshll.u32 %v502_v61, 23 }
 0x195   : > { %v583_v13 = vmul.u32 %v576_v11, %v567_v56  ;;  %v955_v34 = vsub.s32 32, %v954_v55  ;;  %vm1293_vm6 = vcmp.lt.s32.totalorder %v1292_v57, 0  ;;  %vm585_vm7 = vc.u32 %v2057_v52, %v2049_v32 }
 0x196   : > { %v957_v49 = vshll.u32 %v1599_v54, %v954_v55  ;;  %v960_v35 = vshll.u32 %v1600_v58, %v954_v55  ;;  %v587_v26 = vsel %vm585_vm7, %v586_v25, %v2050_v51  ;;  %v963_v39 = vshll.u32 %v1601_v60, %v954_v55 }
 0x197   : > { %v958_v16 = vshrl.u32 %v1600_v58, %v955_v34  ;;  %v961_v36 = vshrl.u32 %v1601_v60, %v955_v34  ;;  %v499_v59 = vshrl.u32 %v481_v2, %v497_v10  ;;  %v588_v9 = vadd.s32 %v587_v26, %v583_v13 }
 0x198   : > { %v948_v11 = vor.u32 8388608, %v947_v12  ;;  %v964_v5 = vshrl.u32 %v1602_v62, %v955_v34  ;;  %v504_v43 = vor.u32 4788187, %v503_v15  ;;  %v2084_v48 = vsel %vm1293_vm6, 0, %v1292_v57 }
 0x199   : > { %v966_v24 = vshll.u32 %v1602_v62, %v954_v55  ;;  %v967_v47 = vshrl.u32 %v1603_v0, %v955_v34  ;;  %v589_v31 = vadd.s32 536870912, %v588_v9  ;;  %v953_v51 = vshrl.u32 %v952_v30, 5 }
 0x19a   : > { %v959_v61 = vor.u32 %v958_v16, %v957_v49  ;;  %v962_v56 = vor.u32 %v961_v36, %v960_v35  ;;  %v965_v6 = vor.u32 %v964_v5, %v963_v39  ;;  %v969_v25 = vshll.u32 %v1603_v0, %v954_v55 }
 0x19b   : > { %v968_v23 = vor.u32 %v967_v47, %v966_v24  ;;  %v970_v2 = vshrl.u32 %v1604_v7, %v955_v34  ;;  %v2093_v10 = vsel %vm1993_vm13, %v1791_v21, %v407_v40  ;;  %v818_v57 = vxor.u32 2147483648, %v2067_v1 }
 0x19c   : > { %v500_v12 = vor.u32 %v499_v59, %v498_v8  ;;  %v2096_v15 = vshrl.u32 %v589_v31, 30  ;;  %v505_v13 = vand.u32 2147483647, %v504_v43  ;;  %v913_v30 = vsub.s32 4294967266, %v2084_v48 }
 0x19d   : > { %v971_v49 = vor.u32 %v970_v2, %v969_v25  ;;  %v988_v35 = vshll.u32 %v948_v11, 8  ;;  %v956_v55 = vshrl.u32 %v1599_v54, %v955_v34  ;;  %vm972_vm8 = vcmp.lt.s32.totalorder %v953_v51, 1 }
 0x19e   : > { %v591_v26 = vshll.u32 %v2096_v15, 30  ;;  %vm975_vm9 = vcmp.lt.s32.totalorder %v953_v51, 4  ;;  %v980_v36 = vsel %vm972_vm8, %v959_v61, %v962_v56  ;;  %vm974_vm10 = vcmp.lt.s32.totalorder %v953_v51, 3 }
 0x19f   : > { %v977_v16 = vsel %vm975_vm9, %v965_v6, 2102212464  ;;  %v981_v40 = vsel %vm975_vm9, %v968_v23, 920167782  ;;  %v985_v39 = vsel %vm975_vm9, %v971_v49, 1326507024  ;;  %v984_v8 = vsel %vm972_vm8, %v962_v56, %v965_v6 }
 0x1a0   : > { %v2101_v5 = vsub.s32 %v588_v9, %v591_v26  ;;  %v634_v59 = vand.u32 2139095040, %v1812_v44  ;;  %v909_v43 = vsub.s32 32, %v2084_v48  ;;  %vm973_vm12 = vcmp.lt.s32.totalorder %v953_v51, 2 }
 0x1a1   : > { %v982_v11 = vsel %vm974_vm10, %v965_v6, %v981_v40  ;;  %v986_v24 = vsel %vm974_vm10, %v968_v23, %v985_v39  ;;  %v976_v34 = vsel %vm972_vm8, %v956_v55, %v959_v61  ;;  %v978_v31 = vsel %vm974_vm10, %v962_v56, %v977_v16 }
 0x1a2   : > { %v594_v47 = vsub.s32 0, %v2101_v5  ;;  %v983_v25 = vsel %vm973_vm12, %v980_v36, %v982_v11  ;;  %v914_v2 = vadd.s32 127, %v913_v30  ;;  %v987_v41 = vsel %vm973_vm12, %v984_v8, %v986_v24 }
 0x1a3   : > { %v2106_v50 = vmul.u32.u64.low %v988_v35, %v983_v25  ;;  %v2107_v49 = vmul.u32.u64.high %v988_v35, %v983_v25, %v2106_v50  ;;  %v507_v9 = vcvt.s32.f32 %v500_v12  ;;  %1428 = vcosq.f32 %v2093_v10 }
 0x1a4   : > { %v1279_v26 = vmin.u32 %v594_v47, %v2101_v5  ;;  %v2111_v3 = vmul.u32.u64.low %v988_v35, %v987_v41  ;;  %v2112_v4 = vmul.u32.u64.high %v988_v35, %v987_v41, %v2111_v3  ;;  %v893_v51 = vadd.s32 %v1973_v18, %v1978_v33 }
 0x1a5   : > { %v979_v61 = vsel %vm973_vm12, %v976_v34, %v978_v31  ;;  %v635_v56 = vshrl.u32 %v634_v59, 23  ;;  %vm427_vm14 = vcmp.lt.s32.totalorder %v1799_v27, 0  ;;  %v508_v6 = vmul.f32 %v507_v9, %v505_v13 }
 0x1a6   : > { %v596_v30 = vclz %v1279_v26  ;;  %v1046_v12 = vand.u32 2139095040, %v1814_v45  ;;  %v911_v55 = vshrl.u32 %v893_v51, %v909_v43  ;;  %v915_v16 = vshll.u32 %v914_v2, 23 }
 0x1a7   : > { %v998_v41 = vadd.s32 1, %v2107_v49  ;;  %v1282_v3 = vadd.s32 4294967169, %v635_v56  ;;  %v819_v36 = vsel %vm736_vm11, %v818_v57, %v2067_v1  ;;  %v995_v33 = vmul.u32 %v988_v35, %v979_v61 }
 0x1a8   : > { %v1280_v18 = vadd.s32 4294967294, %v596_v30  ;;  %vm997_vm15 = vc.u32 %v2112_v4, %v2106_v50  ;;  %v910_v13 = vshll.u32 %v2032_v63, %v2084_v48  ;;  %v1047_v8 = vshrl.u32 %v1046_v12, 23 }
 0x1a9   : > { %v999_v40 = vsel %vm997_vm15, %v998_v41, %v2107_v49  ;;  %v641_v39 = vadd.s32 1, %v1282_v3  ;;  %v509_v59 = vxor.u32 2147483648, %v508_v6  ;;  %v2489_v11 = vand.u32 2147483647, %v1812_v44 }
 0x1aa   : > { %vm1281_vm1 = vcmp.lt.s32.totalorder %v1280_v18, 0  ;;  %v1000_v43 = vadd.s32 %v999_v40, %v995_v33  ;;  %v2130_v24 = vor.u32 %v911_v55, %v910_v13  ;;  %v2132_v1 = vor.u32 4788187, %v915_v16 }
 0x1ab   : > { %v599_v57 = vsel %vm1281_vm1, 0, %v1280_v18  ;;  %vm642_vm11 = vcmp.gt.s32.totalorder %v641_v39, 0  ;;  %v584_v35 = vadd.s32 %v2049_v32, %v2057_v52  ;;  %1430 = vsinq.f32 %v2093_v10 }
 0x1ac   : > { %v600_v47 = vsub.s32 32, %v599_v57  ;;  %v604_v63 = vsub.s32 4294967266, %v599_v57  ;;  %v1001_v48 = vadd.s32 536870912, %v1000_v43  ;;  %v2140_v34 = vsel %vm2039_vm0, %v1793_v22, %v819_v36 }
 0x1ad   : > { %v643_v31 = vsel %vm642_vm11, %v641_v39, 0  ;;  %v1298_v25 = vadd.s32 4294967169, %v1047_v8  ;;  %v601_v2 = vshll.u32 %v2101_v5, %v599_v57  ;;  %v2145_v51 = vpop.eup %1428  ;;  %v2149_v32 = vsel %vm427_vm14, %v509_v59, %v508_v6 }
 0x1ae   : > { %v602_v49 = vshrl.u32 %v584_v35, %v600_v47  ;;  %v605_v9 = vadd.s32 127, %v604_v63  ;;  %v2143_v26 = vshrl.u32 %v1001_v48, 30  ;;  %v917_v52 = vand.u32 2147483647, %v2132_v1 }
 0x1af   : > { %v919_v10 = vcvt.s32.f32 %v2130_v24  ;;  %v645_v61 = vand.u32 31, %v643_v31  ;;  %v638_v5 = vand.u32 8388607, %v2489_v11  ;;  %v644_v55 = vshrl.u32 %v643_v31, 5 }
 0x1b0   : > { %v603_v56 = vor.u32 %v602_v49, %v601_v2  ;;  %v606_v30 = vshll.u32 %v605_v9, 23  ;;  %v1003_v12 = vshll.u32 %v2143_v26, 30  ;;  %v1053_v3 = vadd.s32 1, %v1298_v25 }
 0x1b1   : > { %v646_v16 = vsub.s32 32, %v645_v61  ;;  %v648_v41 = vshll.u32 %v1599_v54, %v645_v61  ;;  %v651_v18 = vshll.u32 %v1600_v58, %v645_v61  ;;  %v654_v33 = vshll.u32 %v1601_v60, %v645_v61 }
 0x1b2   : > { %v607_v36 = vor.u32 4788187, %v606_v30  ;;  %v2157_v6 = vsub.s32 %v1000_v43, %v1003_v12  ;;  %v610_v13 = vcvt.s32.f32 %v603_v56  ;;  %v657_v35 = vshll.u32 %v1602_v62, %v645_v61 }
 0x1b3   : > { %v649_v40 = vshrl.u32 %v1600_v58, %v646_v16  ;;  %v652_v39 = vshrl.u32 %v1601_v60, %v646_v16  ;;  %v655_v8 = vshrl.u32 %v1602_v62, %v646_v16  ;;  %v658_v47 = vshrl.u32 %v1603_v0, %v646_v16 }
 0x1b4   : > { %v608_v59 = vand.u32 2147483647, %v607_v36  ;;  %v1006_v57 = vsub.s32 0, %v2157_v6  ;;  %vm530_vm2 = vcmp.lt.s32.totalorder %v1808_v37, 0  ;;  %v660_v31 = vshll.u32 %v1603_v0, %v645_v61 }
 0x1b5   : > { %v650_v43 = vor.u32 %v649_v40, %v648_v41  ;;  %v653_v63 = vor.u32 %v652_v39, %v651_v18  ;;  %v656_v48 = vor.u32 %v655_v8, %v654_v33  ;;  %v659_v49 = vor.u32 %v658_v47, %v657_v35  ;;  %v2171_v56 = vpop.eup %1430 }
 0x1b6   : > { %v611_v25 = vmul.f32 %v610_v13, %v608_v59  ;;  %v1295_v2 = vmin.u32 %v1006_v57, %v2157_v6  ;;  %v661_v9 = vshrl.u32 %v1604_v7, %v646_v16  ;;  %v639_v30 = vor.u32 8388608, %v638_v5 }
 0x1b7   : > { %v647_v12 = vshrl.u32 %v1599_v54, %v646_v16  ;;  %v1043_v36 = vand.u32 2147483647, %v1814_v45  ;;  %vm1054_vm3 = vcmp.gt.s32.totalorder %v1053_v3, 0  ;;  %vm2177_vm4 = vcmp.le.f32.partialorder %v425_v29, 0.7853982 }
 0x1b8   : > { %vm2183_vm5 = vcmp.le.f32.partialorder %v528_v46, 0.7853982  ;;  %v1008_v18 = vclz %v1295_v2  ;;  %v662_v33 = vor.u32 %v661_v9, %v660_v31  ;;  %vm663_vm6 = vcmp.lt.s32.totalorder %v644_v55, 1 }
 0x1b9   : > { %vm666_vm7 = vcmp.lt.s32.totalorder %v644_v55, 4  ;;  %vm665_vm8 = vcmp.lt.s32.totalorder %v644_v55, 3  ;;  %v671_v16 = vsel %vm663_vm6, %v650_v43, %v653_v63  ;;  %v612_v40 = vxor.u32 2147483648, %v611_v25 }
 0x1ba   : > { %v668_v5 = vsel %vm666_vm7, %v656_v48, 2102212464  ;;  %v672_v13 = vsel %vm666_vm7, %v659_v49, 920167782  ;;  %v1296_v39 = vadd.s32 4294967294, %v1008_v18  ;;  %v675_v8 = vsel %vm663_vm6, %v653_v63, %v656_v48 }
 0x1bb   : > { %v673_v29 = vsel %vm665_vm8, %v656_v48, %v672_v13  ;;  %vm664_vm9 = vcmp.lt.s32.totalorder %v644_v55, 2  ;;  %v667_v59 = vsel %vm663_vm6, %v647_v12, %v650_v43  ;;  %v669_v57 = vsel %vm665_vm8, %v653_v63, %v668_v5 }
 0x1bc   : > { %v676_v35 = vsel %vm666_vm7, %v662_v33, 1326507024  ;;  %v996_v46 = vadd.s32 %v2106_v50, %v2112_v4  ;;  %vm1297_vm10 = vcmp.lt.s32.totalorder %v1296_v39, 0  ;;  %v674_v47 = vsel %vm664_vm9, %v671_v16, %v673_v29 }
 0x1bd   : > { %v677_v31 = vsel %vm665_vm8, %v659_v49, %v676_v35  ;;  %v1011_v2 = vsel %vm1297_vm10, 0, %v1296_v39  ;;  %v679_v11 = vshll.u32 %v639_v30, 8  ;;  %v1055_v23 = vsel %vm1054_vm3, %v1053_v3, 0 }
 0x1be   : > { %v678_v9 = vsel %vm664_vm9, %v675_v8, %v677_v31  ;;  %v613_v18 = vsel %vm530_vm2, %v612_v40, %v611_v25  ;;  %v1012_v13 = vsub.s32 32, %v1011_v2  ;;  %v1016_v48 = vsub.s32 4294967266, %v1011_v2 }
 0x1bf   : > { %v670_v55 = vsel %vm664_vm9, %v667_v59, %v669_v57  ;;  %v2192_v43 = vmul.u32.u64.low %v679_v11, %v678_v9  ;;  %v2193_v63 = vmul.u32.u64.high %v679_v11, %v678_v9, %v2192_v43  ;;  %v1013_v4 = vshll.u32 %v2157_v6, %v1011_v2 }
 0x1c0   : > { %v2195_v12 = vmul.u32.u64.low %v679_v11, %v674_v47  ;;  %v2196_v33 = vmul.u32.u64.high %v679_v11, %v674_v47, %v2195_v12  ;;  %v1014_v50 = vshrl.u32 %v996_v46, %v1012_v13  ;;  %v1017_v49 = vadd.s32 127, %v1016_v48 }
 0x1c1   : > { %v1057_v30 = vand.u32 31, %v1055_v23  ;;  %v2204_v3 = vsel %vm2177_vm4, %v1799_v27, %v2149_v32  ;;  %v920_v25 = vmul.f32 %v919_v10, %v917_v52  ;;  %v616_v5 = vsel %vm2183_vm5, %v1808_v37, %v613_v18 }
 0x1c2   : > { %v1050_v6 = vand.u32 8388607, %v1043_v36  ;;  %v1015_v16 = vor.u32 %v1014_v50, %v1013_v4  ;;  %v1018_v40 = vshll.u32 %v1017_v49, 23  ;;  %v686_v8 = vmul.u32 %v679_v11, %v670_v55 }
 0x1c3   : > { %v1058_v39 = vsub.s32 32, %v1057_v30  ;;  %v1060_v29 = vshll.u32 %v1599_v54, %v1057_v30  ;;  %vm688_vm12 = vc.u32 %v2193_v63, %v2195_v12  ;;  %v689_v1 = vadd.s32 1, %v2196_v33 }
 0x1c4   : > { %v1063_v24 = vshll.u32 %v1600_v58, %v1057_v30  ;;  %v1019_v32 = vor.u32 4788187, %v1018_v40  ;;  %v1022_v52 = vcvt.s32.f32 %v1015_v16  ;;  %v2220_v10 = vshrl.u32 %v1055_v23, 5 }
 0x1c5   : > { %v1061_v59 = vshrl.u32 %v1600_v58, %v1058_v39  ;;  %v690_v57 = vsel %vm688_vm12, %v689_v1, %v2196_v33  ;;  %v1064_v35 = vshrl.u32 %v1601_v60, %v1058_v39  ;;  %v1066_v46 = vshll.u32 %v1601_v60, %v1057_v30 }
 0x1c6   : > { %v1067_v11 = vshrl.u32 %v1602_v62, %v1058_v39  ;;  %vm839_vm15 = vcmp.lt.s32.totalorder %v1801_v28, 0  ;;  %v1020_v47 = vand.u32 2147483647, %v1019_v32  ;;  %v691_v31 = vadd.s32 %v690_v57, %v686_v8 }
 0x1c7   : > { %v1062_v2 = vor.u32 %v1061_v59, %v1060_v29  ;;  %v1069_v9 = vshll.u32 %v1602_v62, %v1057_v30  ;;  %vm942_vm1 = vcmp.lt.s32.totalorder %v1810_v38, 0  ;;  %v1065_v23 = vor.u32 %v1064_v35, %v1063_v24 }
 0x1c8   : > { %v1068_v18 = vor.u32 %v1067_v11, %v1066_v46  ;;  %v1070_v58 = vshrl.u32 %v1603_v0, %v1058_v39  ;;  %v1072_v13 = vshll.u32 %v1603_v0, %v1057_v30  ;;  %v921_v48 = vxor.u32 2147483648, %v920_v25 }
 0x1c9   : > { %v1023_v55 = vmul.f32 %v1022_v52, %v1020_v47  ;;  %v692_v60 = vadd.s32 536870912, %v691_v31  ;;  %v1073_v43 = vshrl.u32 %v1604_v7, %v1058_v39  ;;  %v2511_v33 = vand.u32 2147483647, %v1801_v28 }
 0x1ca   : > { %1432 = vsinq.f32 %v616_v5  ;;  %v1051_v62 = vor.u32 8388608, %v1050_v6  ;;  %v1071_v50 = vor.u32 %v1070_v58, %v1069_v9  ;;  %vm1075_vm3 = vcmp.lt.s32.totalorder %v2220_v10, 1 }
 0x1cb   : > { %vm2235_vm11 = vcmp.le.f32.partialorder %v2511_v33, 0.7853982  ;;  %v2240_v49 = vshrl.u32 %v692_v60, 30  ;;  %v1074_v16 = vor.u32 %v1073_v43, %v1072_v13  ;;  %vm1077_vm6 = vcmp.lt.s32.totalorder %v2220_v10, 3 }
 0x1cc   : > { %vm1078_vm7 = vcmp.lt.s32.totalorder %v2220_v10, 4  ;;  %v1059_v0 = vshrl.u32 %v1599_v54, %v1058_v39  ;;  %v1083_v30 = vsel %vm1075_vm3, %v1062_v2, %v1065_v23  ;;  %v1024_v29 = vxor.u32 2147483648, %v1023_v55 }
 0x1cd   : > { %v1080_v7 = vsel %vm1078_vm7, %v1068_v18, 2102212464  ;;  %v1084_v40 = vsel %vm1078_vm7, %v1071_v50, 920167782  ;;  %v694_v6 = vshll.u32 %v2240_v49, 30  ;;  %v1087_v1 = vsel %vm1075_vm3, %v1065_v23, %v1068_v18 }
 0x1ce   : > { %v1085_v8 = vsel %vm1077_vm6, %v1068_v18, %v1084_v40  ;;  %v614_v24 = vsub.s32 4, %v2096_v15  ;;  %1434 = vcosq.f32 %v616_v5  ;;  %vm1076_vm8 = vcmp.lt.s32.totalorder %v2220_v10, 2 }
 0x1cf   : > { %v1088_v54 = vsel %vm1078_vm7, %v1074_v16, 1326507024  ;;  %v2254_v39 = vsub.s32 %v691_v31, %v694_v6  ;;  %v1086_v32 = vsel %vm1076_vm8, %v1083_v30, %v1085_v8  ;;  %v1091_v59 = vshll.u32 %v1051_v62, 8 }
 0x1d0   : > { %v1089_v52 = vsel %vm1077_vm6, %v1071_v50, %v1088_v54  ;;  %v922_v57 = vsel %vm839_vm15, %v921_v48, %v920_v25  ;;  %v1079_v35 = vsel %vm1075_vm3, %v1059_v0, %v1062_v2  ;;  %v1081_v5 = vsel %vm1077_vm6, %v1065_v23, %v1080_v7 }
 0x1d1   : > { %v1090_v46 = vsel %vm1076_vm8, %v1087_v1, %v1089_v52  ;;  %v1025_v11 = vsel %vm942_vm1, %v1024_v29, %v1023_v55  ;;  %v697_v47 = vsub.s32 0, %v2254_v39  ;;  %1436 = vcosq.f32 %v2140_v34 }
 0x1d2   : > { %v2271_v31 = vmul.u32.u64.low %v1091_v59, %v1090_v46  ;;  %v2272_v9 = vmul.u32.u64.high %v1091_v59, %v1090_v46, %v2271_v31  ;;  %v615_v25 = vsel %vm530_vm2, %v614_v24, %v2096_v15  ;;  %1438 = vsinq.f32 %v2140_v34 }
 0x1d3   : > { %v2278_v2 = vmul.u32.u64.low %v1091_v59, %v1086_v32  ;;  %v2279_v18 = vmul.u32.u64.high %v1091_v59, %v1086_v32, %v2278_v2  ;;  %v925_v23 = vsel %vm2235_vm11, %v1801_v28, %v922_v57  ;;  %v2514_v58 = vand.u32 2147483647, %v1810_v38 }
 0x1d4   : > { %v1283_v48 = vmin.u32 %v697_v47, %v2254_v39  ;;  %v1433_v55 = vpop.eup %1432  ;;  %1440 = vcosq.f32 %v2204_v3  ;;  %v923_v15 = vsub.s32 4, %v2020_v20  ;;  %v1082_v60 = vsel %vm1076_vm8, %v1079_v35, %v1081_v5 }
 0x1d5   : > { %vm2288_vm9 = vcmp.le.f32.partialorder %v2514_v58, 0.7853982  ;;  %1442 = vsinq.f32 %v2204_v3  ;;  %v617_v43 = vsel %vm2183_vm5, 0, %v615_v25  ;;  %vm1100_vm2 = vc.u32 %v2272_v9, %v2278_v2 }
 0x1d6   : > { %v1028_v34 = vsel %vm2288_vm9, %v1810_v38, %v1025_v11  ;;  %v699_v33 = vclz %v1283_v48  ;;  %v2517_v62 = vsel %vm1993_vm13, 0, %v2000_v42  ;;  %v2518_v16 = vsel %vm2039_vm0, 0, %v2015_v14 }
 0x1d7   : > { %v415_v50 = vand.u32 3, %v2517_v62  ;;  %v2313_v10 = vand.u32 3, %v2518_v16  ;;  %1444 = vcosq.f32 %v925_v23  ;;  %v1101_v3 = vadd.s32 1, %v2279_v18 }
 0x1d8   : > { %v2519_v61 = vsub.s32 4, %v1951_v17  ;;  %1446 = vsinq.f32 %v1028_v34  ;;  %v1284_v53 = vadd.s32 4294967294, %v699_v33  ;;  %v1098_v42 = vmul.u32 %v1091_v59, %v1082_v60  ;;  %v1435_v7 = vpop.eup %1434 }
 0x1d9   : > { %v2326_v14 = vsel %vm839_vm15, %v923_v15, %v2020_v20  ;;  %1448 = vsinq.f32 %v925_v23  ;;  %v621_v19 = vand.u32 3, %v617_v43  ;;  %v1102_v30 = vsel %vm1100_vm2, %v1101_v3, %v2279_v18 }
 0x1da   : > { %v2321_v0 = vsel %vm427_vm14, %v2519_v61, %v1951_v17  ;;  %1450 = vcosq.f32 %v1028_v34  ;;  %vm1285_vm13 = vcmp.lt.s32.totalorder %v1284_v53, 0  ;;  %v1103_v40 = vadd.s32 %v1102_v30, %v1098_v42 }
 0x1db   : > { %v418_v29 = vxor.u32 2147483648, %v2171_v56  ;;  %v687_v17 = vadd.s32 %v2195_v12, %v2193_v63  ;;  %v702_v6 = vsel %vm1285_vm13, 0, %v1284_v53  ;;  %v421_v8 = vxor.u32 2147483648, %v2145_v51  ;;  %v1437_v52 = vpop.eup %1436 }
 0x1dc   : > { %v624_v1 = vxor.u32 2147483648, %v1433_v55  ;;  %v703_v24 = vsub.s32 32, %v702_v6  ;;  %v707_v54 = vsub.s32 4294967266, %v702_v6  ;;  %v1104_v20 = vadd.s32 536870912, %v1103_v40  ;;  %v1439_v57 = vpop.eup %1438 }
 0x1dd   : > { %v627_v32 = vxor.u32 2147483648, %v1435_v7  ;;  %v1026_v59 = vsub.s32 4, %v2143_v26  ;;  %vm417_vm0 = vcmp.eq.s32.totalorder %v415_v50, 0  ;;  %vm420_vm14 = vcmp.eq.s32.totalorder %v415_v50, 2 }
 0x1de   : > { %vm623_vm5 = vcmp.eq.s32.totalorder %v621_v19, 0  ;;  %v704_v35 = vshll.u32 %v2254_v39, %v702_v6  ;;  %v705_v5 = vshrl.u32 %v687_v17, %v703_v24  ;;  %v708_v46 = vadd.s32 127, %v707_v54  ;;  %v2337_v12 = vpop.eup %1440 }
 0x1df   : > { %v2335_v63 = vshrl.u32 %v1104_v20, 30  ;;  %v419_v11 = vsel %vm417_vm0, %v2145_v51, %v418_v29  ;;  %v422_v47 = vsel %vm420_vm14, %v421_v8, %v2171_v56  ;;  %v625_v31 = vsel %vm623_vm5, %v1435_v7, %v624_v1  ;;  %v2341_v25 = vpop.eup %1442 }
 0x1e0   : > { %vm626_vm10 = vcmp.eq.s32.totalorder %v621_v19, 2  ;;  %v706_v18 = vor.u32 %v705_v5, %v704_v35  ;;  %v709_v23 = vshll.u32 %v708_v46, 23  ;;  %vm633_vm12 = vcmp.lt.s32.totalorder %v1812_v44, 0 }
 0x1e1   : > { %v1106_v58 = vshll.u32 %v2335_v63, 30  ;;  %v628_v48 = vsel %vm626_vm10, %v627_v32, %v1433_v55  ;;  %v2344_v39 = vpop.eup %1444  ;;  %vm414_vm15 = vweird.f32 %v1791_v21  ;;  %vm416_vm3 = vcmp.lt.s32.totalorder %v415_v50, 2 }
 0x1e2   : > { %v830_v15 = vxor.u32 2147483648, %v1439_v57  ;;  %v833_v51 = vxor.u32 2147483648, %v1437_v52  ;;  %v1447_v34 = vpop.eup %1446  ;;  %v1027_v56 = vsel %vm942_vm1, %v1026_v59, %v2143_v26  ;;  %v2520_v60 = vand.u32 2147483647, %v1812_v44 }
 0x1e3   : > { %v710_v55 = vor.u32 4788187, %v709_v23  ;;  %v1107_v33 = vsub.s32 %v1103_v40, %v1106_v58  ;;  %vm622_vm7 = vcmp.lt.s32.totalorder %v621_v19, 2  ;;  %v2357_v62 = vpop.eup %1448  ;;  %v717_v50 = vsub.s32 4, %v2240_v49 }
 0x1e4   : > { %vm2353_vm6 = vcmp.le.f32.partialorder %v2520_v60, 0.7853982  ;;  %v423_v16 = vsel %vm416_vm3, %v419_v11, %v422_v47  ;;  %v629_v3 = vsel %vm622_vm7, %v625_v31, %v628_v48  ;;  %vm829_vm8 = vcmp.eq.s32.totalorder %v2313_v10, 0  ;;  %v1451_v61 = vpop.eup %1450  ;;  %v2382_v47 = vpop.permute.xlu0 %1155 }
 0x1e5   : > { %v711_v53 = vand.u32 2147483647, %v710_v55  ;;  %v713_v26 = vcvt.s32.f32 %v706_v18  ;;  %v1109_v42 = vsub.s32 0, %v1107_v33  ;;  %vm832_vm1 = vcmp.eq.s32.totalorder %v2313_v10, 2 }
 0x1e6   : > { %v831_v7 = vsel %vm829_vm8, %v1437_v52, %v830_v15  ;;  %v834_v30 = vsel %vm832_vm1, %v833_v51, %v1439_v57  ;;  %v1029_v40 = vsel %vm2288_vm9, 0, %v1027_v56  ;;  %v1036_v19 = vxor.u32 2147483648, %v1447_v34 }
 0x1e7   : > { %v714_v29 = vmul.f32 %v713_v26, %v711_v53  ;;  %v1299_v17 = vmin.u32 %v1109_v42, %v1107_v33  ;;  %vm620_vm2 = vweird.f32 %v1808_v37  ;;  %v1033_v6 = vand.u32 3, %v1029_v40 }
 0x1e8   : > { %v424_v8 = vsel %vm414_vm15, nan, %v423_v16  ;;  %v630_v1 = vsel %vm620_vm2, nan, %v629_v3  ;;  %vm828_vm13 = vcmp.lt.s32.totalorder %v2313_v10, 2  ;;  %v1039_v24 = vxor.u32 2147483648, %v1451_v61 }
 0x1e9   : > { %v715_v54 = vxor.u32 2147483648, %v714_v29  ;;  %v1111_v20 = vclz %v1299_v17  ;;  %v835_v32 = vsel %vm828_vm13, %v831_v7, %v834_v30  ;;  %vm1035_vm0 = vcmp.eq.s32.totalorder %v1033_v6, 0 }
 0x1ea   : > { %vm826_vm9 = vweird.f32 %v1793_v22  ;;  %vm1034_vm14 = vcmp.lt.s32.totalorder %v1033_v6, 2  ;;  %v1037_v13 = vsel %vm1035_vm0, %v1451_v61, %v1036_v19  ;;  %vm1038_vm5 = vcmp.eq.s32.totalorder %v1033_v6, 2 }
 0x1eb   : > { %v716_v37 = vsel %vm633_vm12, %v715_v54, %v714_v29  ;;  %v1300_v52 = vadd.s32 4294967294, %v1111_v20  ;;  %v1040_v21 = vsel %vm1038_vm5, %v1039_v24, %v1447_v34  ;;  %v1146_v59 = vadd.f32 %v630_v1, %v424_v8 }
 0x1ec   : > { %v718_v10 = vsel %vm633_vm12, %v717_v50, %v2240_v49  ;;  %v719_v57 = vsel %vm2353_vm6, %v1812_v44, %v716_v37  ;;  %v836_v35 = vsel %vm826_vm9, nan, %v835_v32  ;;  %v1041_v5 = vsel %vm1034_vm14, %v1037_v13, %v1040_v21 }
 0x1ed   : > { %1452 = vcosq.f32 %v719_v57  ;;  %vm1301_vm10 = vcmp.lt.s32.totalorder %v1300_v52, 0  ;;  %vm1032_vm15 = vweird.f32 %v1810_v38  ;;  %v1148_v22 = vadd.f32 %v1146_v59, %v836_v35 }
 0x1ee   : > { %v514_v46 = vsel %vm2177_vm4, 0, %v2321_v0  ;;  %1454 = vsinq.f32 %v719_v57  ;;  %v1114_v11 = vsel %vm1301_vm10, 0, %v1300_v52  ;;  %v1042_v49 = vsel %vm1032_vm15, nan, %v1041_v5 }
 0x1ef   : > { %v1099_v31 = vadd.s32 %v2278_v2, %v2272_v9  ;;  %v1115_v18 = vsub.s32 32, %v1114_v11  ;;  %v1119_v23 = vsub.s32 4294967266, %v1114_v11  ;;  %v1150_v58 = vadd.f32 %v1148_v22, %v1042_v49 }
 0x1f0   : > { %v926_v38 = vsel %vm2235_vm11, 0, %v2326_v14  ;;  %v720_v48 = vsel %vm2353_vm6, 0, %v718_v10  ;;  %v1116_v41 = vshll.u32 %v1107_v33, %v1114_v11  ;;  %v518_v34 = vand.u32 3, %v514_v46 }
 0x1f1   : > { %v1117_v0 = vshrl.u32 %v1099_v31, %v1115_v18  ;;  %v1120_v15 = vadd.s32 127, %v1119_v23  ;;  %v1158_v51 = vadd.f32 %v2382_v47, %v1150_v58  ;;  %v521_v9 = vxor.u32 2147483648, %v2341_v25 }
 0x1f2   : > { %v524_v2 = vxor.u32 2147483648, %v2337_v12  ;;  %v930_v4 = vand.u32 3, %v926_v38  ;;  %v724_v14 = vand.u32 3, %v720_v48  ;;  %v933_v55 = vxor.u32 2147483648, %v2357_v62 }
 0x1f3   : > { %v1118_v56 = vor.u32 %v1117_v0, %v1116_v41  ;;  %v1121_v60 = vshll.u32 %v1120_v15, 23  ;;  %1160 = vst [vmem:[%s2394_s9] sm:$0xff] %v1158_v51  ;;  %v936_v33 = vxor.u32 2147483648, %v2344_v39  ;;  %vm723_vm4 = vweird.f32 %v1812_v44 }
 0x1f4   : > { %vm519_vm11 = vcmp.lt.s32.totalorder %v518_v34, 2  ;;  %vm520_vm12 = vcmp.eq.s32.totalorder %v518_v34, 0  ;;  %vm523_vm3 = vcmp.eq.s32.totalorder %v518_v34, 2  ;;  %vm729_vm6 = vcmp.eq.s32.totalorder %v724_v14, 2 }
 0x1f5   : > { %v1122_v43 = vor.u32 4788187, %v1121_v60  ;;  %v1125_v3 = vcvt.s32.f32 %v1118_v56  ;;  %v522_v61 = vsel %vm520_vm12, %v2337_v12, %v521_v9  ;;  %v525_v53 = vsel %vm523_vm3, %v524_v2, %v2341_v25 }
 0x1f6   : > { %vm932_vm7 = vcmp.eq.s32.totalorder %v930_v4, 0  ;;  %vm935_vm8 = vcmp.eq.s32.totalorder %v930_v4, 2  ;;  %vm726_vm1 = vcmp.eq.s32.totalorder %v724_v14, 0  ;;  %vm1045_vm2 = vcmp.lt.s32.totalorder %v1814_v45, 0 }
 0x1f7   : > { %v1453_v50 = vpop.eup %1452  ;;  %v1123_v16 = vand.u32 2147483647, %v1122_v43  ;;  %v934_v40 = vsel %vm932_vm7, %v2344_v39, %v933_v55  ;;  %v937_v19 = vsel %vm935_vm8, %v936_v33, %v2357_v62  ;;  %v526_v17 = vsel %vm519_vm11, %v522_v61, %v525_v53 }
 0x1f8   : > { %v1455_v26 = vpop.eup %1454  ;;  %v730_v42 = vxor.u32 2147483648, %v1453_v50  ;;  %vm725_vm13 = vcmp.lt.s32.totalorder %v724_v14, 2  ;;  %vm931_vm0 = vcmp.lt.s32.totalorder %v930_v4, 2  ;;  %vm2408_vm9 = vcmp.le.f32.partialorder %v1043_v36, 0.7853982 }
 0x1f9   : > { %v727_v7 = vxor.u32 2147483648, %v1455_v26  ;;  %v1126_v30 = vmul.f32 %v1125_v3, %v1123_v16  ;;  %vm517_vm14 = vweird.f32 %v1799_v27  ;;  %v938_v39 = vsel %vm931_vm0, %v934_v40, %v937_v19 }
 0x1fa   : > { %v731_v29 = vsel %vm729_vm6, %v730_v42, %v1455_v26  ;;  %v1129_v24 = vsub.s32 4, %v2335_v63  ;;  %v527_v54 = vsel %vm517_vm14, nan, %v526_v17  ;;  %vm929_vm5 = vweird.f32 %v1801_v28 }
 0x1fb   : > { %v728_v12 = vsel %vm726_vm1, %v1453_v50, %v727_v7  ;;  %v1127_v25 = vxor.u32 2147483648, %v1126_v30  ;;  %v939_v32 = vsel %vm929_vm5, nan, %v938_v39  ;;  %vm1135_vm11 = vweird.f32 %v1814_v45 }
 0x1fc   : > { %v732_v6 = vsel %vm725_vm13, %v728_v12, %v731_v29  ;;  %v1130_v44 = vsel %vm1045_vm2, %v1129_v24, %v2335_v63 }
 0x1fd   : > { %v733_v62 = vsel %vm723_vm4, nan, %v732_v6  ;;  %v1128_v1 = vsel %vm1045_vm2, %v1127_v25, %v1126_v30  ;;  %v1132_v13 = vsel %vm2408_vm9, 0, %v1130_v44 }
 0x1fe   : > { %v1131_v20 = vsel %vm2408_vm9, %v1814_v45, %v1128_v1  ;;  %v1147_v36 = vadd.f32 %v733_v62, %v527_v54  ;;  %v1136_v37 = vand.u32 3, %v1132_v13 }
 0x1ff   : > { %1456 = vcosq.f32 %v1131_v20 }
 0x200   : > { %1458 = vsinq.f32 %v1131_v20  ;;  %v1149_v27 = vadd.f32 %v1147_v36, %v939_v32  ;;  %vm1141_vm10 = vcmp.eq.s32.totalorder %v1136_v37, 2  ;;  %vm1138_vm15 = vcmp.eq.s32.totalorder %v1136_v37, 0 }
 0x201   : > { %vm1137_vm4 = vcmp.lt.s32.totalorder %v1136_v37, 2 }
 0x209   : > { %v1457_v52 = vpop.eup %1456 }
 0x20a   : > { %v1459_v21 = vpop.eup %1458  ;;  %v1142_v59 = vxor.u32 2147483648, %v1457_v52 }
 0x20b   : > { %v1139_v28 = vxor.u32 2147483648, %v1459_v21 }
 0x20c   : > { %v1143_v10 = vsel %vm1141_vm10, %v1142_v59, %v1459_v21 }
 0x20d   : > { %v1140_v57 = vsel %vm1138_vm15, %v1457_v52, %v1139_v28 }
 0x20e   : > { %v1144_v63 = vsel %vm1137_vm4, %v1140_v57, %v1143_v10 }
 0x20f   : > { %v1145_v35 = vsel %vm1135_vm11, nan, %v1144_v63 }
 0x210   : > { %v1151_v5 = vadd.f32 %v1149_v27, %v1145_v35 }
 0x212   : > { %v1159_v22 = vadd.f32 %v2382_v47, %v1151_v5 }
 0x214   : > { %1161 = vst [vmem:[%s2394_s9 + $0x8] sm:$0xff] %v1159_v22 }
 0x215   : > { %1531 = shalt.err (!%p1528_p11)
}
 0x216   : > { %s1532_s10 = scalar_lea.hbm %s2434_s5, 256  ;;  %s1536_s19 = scalar_lea.hbm %s2482_s3, 512 }
 0x217   : > { %p1533_p13 = scmp.ne.s32.totalorder %s2434_s5, %s1532_s10  ;;  %p1537_p12 = scmp.lt.u32.totalorder %s2434_s5, %s2482_s3 }
 0x218   : > { %p1538_p0 = scmp.lt.u32.totalorder %s1536_s19, %s1532_s10  ;;  %p1540_p8 = scmp.lt.u32.totalorder %s1532_s10, %s2434_s5 }
 0x219   : > { %p1534_p2 = pnand %p1533_p13, %p2525_p9 }
 0x21a   : > { %p1539_p3 = por %p1538_p0, %p1537_p12 }
 0x21b   : > { %p1535_p6 = pneg %p1534_p2 }
 0x21c   : > { %p1541_p10 = por %p1540_p8, %p1539_p3 }
 0x21e   : > { %p1542_p1 = pnand %p1541_p10, %p1535_p6 }
 0x220   : > { %1545 = shalt.err (!%p1542_p1)
}
 0x221   : > { %1363 = dma.vmem_to_hbm [thread:$0]  (%p2525_p9), %s2436_s29, 256, %s2434_s5, %s1163_s6  }
 0x222 PF: > { %s1189_s26 = sand.u32 1, %s1576_s12   ;;  %p2526_p4 = scmp.ne.s32.totalorder %s2493_s25, 0 }
 0x223   : > { %p2527_p7 = scmp.ge.s32.totalorder %s1588_s15, 2  ;;  %s1190_s4 = scalar_lea.sflag [#allocation4], %s1189_s26 }
 0x225   : > { %p1374_p5 = pnand %p2527_p7, %p2526_p4 }
 0x227   : > { %1571 = dma.done.wait (!%p1374_p5), %s1190_s4, 256  }
 0x228   : > { %1573 = vsyncadd (!%p1374_p5), %s1190_s4, 4294967040  ;;  %p17_p11 = scmp.ge.s32.totalorder %s1651_s18, 4   ;;  %s2528_s12 = smov %s1580_s13 }
 0x229   : > { %s2529_s13 = smov %s1584_s14  ;;  %s2530_s14 = smov %s1663_s21 }
 0x22a   : > { %s2531_s15 = smov %s1651_s18  ;;  %19 = sbr.rel (!%p17_p11) target bundleno = 6 (0x6), region = 81 }
 0x231   :  { %1195 = vsyncpa [#allocation3], 1 }
 0x232   :  { %1197 = vsyncpa [#allocation3 + $0x1], 1 }
 0x233   :  { %1198 = vsyncpa [#allocation6], 1 }
 0x234   :  { %1199 = vsyncpa [#allocation4], 1 }
 0x235   :  { %1201 = vsyncpa [#allocation4 + $0x1], 1 }

</bundles_post_ra>
